<compile_context>
chip_gen: v7x
topology: tpu7x:2x2x1
jax: 0.10.0
libtpu: 0.0.40
codegen_flags: <defaults>
</compile_context>

<pallas_src>
import functools

import jax
import jax.numpy as jnp
from jax import lax
from jax.experimental import pallas as pl
from jax.experimental.pallas import tpu as pltpu

NEG_BIG = -9e15  # matches the -9000000000000000.0 mask constant in PyTorch


def _leaky_relu(x, alpha):
    return jnp.where(x > 0, x, alpha * x)


def _elu(x):
    # clamp the exp argument so the unselected branch never produces inf
    return jnp.where(x > 0, x, jnp.exp(jnp.minimum(x, 0.0)) - 1.0)


def _masked_softmax_last(e, mask):
    """softmax over the last axis with mask==False entries forced to ~0."""
    att = jnp.where(mask, e, NEG_BIG)
    att = att - jnp.max(att, axis=-1, keepdims=True)
    p = jnp.exp(att)
    return p * pl.reciprocal(jnp.sum(p, axis=-1, keepdims=True), approx=True)


def _mean_cosine(a, b):
    """mean(cosine_similarity(a, b, dim=1)) -> (1, 1) array."""
    dot = jnp.sum(a * b, axis=1, keepdims=True)                 # (M, 1)
    na = jnp.sqrt(jnp.sum(a * a, axis=1, keepdims=True))
    nb = jnp.sqrt(jnp.sum(b * b, axis=1, keepdims=True))
    cos = dot * pl.reciprocal(jnp.maximum(na * nb, 1e-8), approx=True)
    # mean as sum * (1/M), keeping a (1, 1) shape (no scalar re-broadcast)
    return jnp.sum(cos, axis=0, keepdims=True) * (1.0 / a.shape[0])


def metagraph_kernel(feat_ref, buf_ref, w1_ref, wa1_ref, wa2_ref,
                     w2_ref, wo1_ref, wo2_ref,
                     rep_ref, cm_ref, ctm_ref, cp_ref,
                     *, nheads, alpha, batch_size):
    feat = feat_ref[...].astype(jnp.float32)                    # (N, Fin)
    n, fin = feat.shape

    # super-graph adjacency is structurally (1 - I): build mask in-kernel
    row = lax.broadcasted_iota(jnp.int32, (n, n), 0)
    col = lax.broadcasted_iota(jnp.int32, (n, n), 1)
    offdiag = row != col                                        # (N, N) bool

    # ---------------- layer 1: all heads batched over a leading head axis ----
    feat_b = jnp.broadcast_to(feat[None], (nheads, n, fin))     # (H, N, Fin)
    # per-head projections: one batched MXU contraction (no per-head loop)
    wh = jnp.einsum('hnf,hfo->hno', feat_b, w1_ref[...],
                    preferred_element_type=jnp.float32)         # (H, N, nhid)
    # attention logits directly from matmuls (a1/a2 folded into W wrapper-side)
    s1 = jnp.einsum('hnf,hfo->hno', feat_b, wa1_ref[...],
                    preferred_element_type=jnp.float32)         # (H, N, 1)
    s2 = jnp.einsum('hqf,hnf->hqn', wa2_ref[...], feat_b,
                    preferred_element_type=jnp.float32)         # (H, 1, N)
    e = _leaky_relu(s1 + s2, alpha)                             # (H, N, N)
    att = _masked_softmax_last(e, offdiag[None, :, :])          # (H, N, N)
    hp = jnp.einsum('hij,hjf->hif', att, wh,
                    preferred_element_type=jnp.float32)         # (H, N, nhid)
    hp = _elu(hp)                                               # concat=True ELU
    # TODO(synk): F.dropout (input / attention / hidden, p=0.6) is evaluated in
    # eval mode (identity); training parity would need pltpu.prng_* masks.

    # ------------- output GAT layer (concat=False), head-concat fused --------
    # x = concat_h(hp[h]);  x @ W_out == sum_h hp[h] @ W_out[h*nhid:(h+1)*nhid]
    y = jnp.einsum('hnf,hfo->hno', hp, w2_ref[...],
                   preferred_element_type=jnp.float32)          # (H, N, D)
    wh_out = jnp.sum(y, axis=0)                                 # (N, D)
    o1 = jnp.sum(jnp.einsum('hnf,hfo->hno', hp, wo1_ref[...],
                            preferred_element_type=jnp.float32),
                 axis=0)                                        # (N, 1)
    o2 = jnp.sum(jnp.einsum('hqf,hnf->hqn', wo2_ref[...], hp,
                            preferred_element_type=jnp.float32),
                 axis=0)                                        # (1, N)
    e2 = _leaky_relu(o1 + o2, alpha)                            # (N, N)
    att2 = _masked_softmax_last(e2, offdiag)                    # (N, N)
    h2 = jnp.dot(att2, wh_out, preferred_element_type=jnp.float32)   # (N, D)

    # GAT head: F.elu then log_softmax(dim=1)
    x = _elu(h2)
    x = x - jnp.max(x, axis=1, keepdims=True)
    lse = jnp.log(jnp.sum(jnp.exp(x), axis=1, keepdims=True))
    rep = x - lse                                               # (N, D)

    # ------------- cosine-similarity correlations, same launch ---------------
    buf = buf_ref[...].astype(jnp.float32)                      # (M, D)
    meta = feat[2 * batch_size:]                                # (M, D)
    cm_ref[...] = _mean_cosine(buf, meta)
    ctm_ref[...] = _mean_cosine(rep[n - batch_size:], meta)
    cp_ref[...] = _mean_cosine(rep[:2 * batch_size], feat[:2 * batch_size])

    rep_ref[...] = rep


def _prep_gat_params(w_heads, a1_heads, a2_heads, w_out, a1_out, a2_out):
    """Fold the attention `a` vectors into matmul operands (wrapper-side, free).

    w_heads: (H, Fin, nhid); a1/a2_heads: (H, nhid)
    w_out:   (H*nhid, D);    a1/a2_out:  (1, D)
    """
    nheads, _, nhid = w_heads.shape
    d_out = w_out.shape[1]
    wa1 = jnp.einsum('hfo,ho->hf', w_heads, a1_heads)[:, :, None]   # (H, Fin, 1)
    wa2 = jnp.einsum('hfo,ho->hf', w_heads, a2_heads)[:, None, :]   # (H, 1, Fin)
    w2 = w_out.reshape(nheads, nhid, d_out)                         # (H, nhid, D)
    wo1 = (w_out @ a1_out.T).reshape(nheads, nhid, 1)               # (H, nhid, 1)
    wo2 = (w_out @ a2_out.T).reshape(nheads, 1, nhid)               # (H, 1, nhid)
    return wa1, wa2, w2, wo1, wo2


def metagraph_fd_forward(inputs, params, *, alpha=0.2):
    meta_v = params["meta_graph_vertex"]
    buf = params["meta_graph_vertex_buffer"]
    # PyTorch's in-place buffer update (buffer <- meta_graph_vertex) happens
    # AFTER correlation_meta is computed with the old buffer; returned
    # functionally here.
    new_buffer = meta_v

    two_b = inputs.shape[0]
    batch_size = two_b // 2
    m, d = meta_v.shape
    n = two_b + m

    # feature = [protos ; meta_graph_vertex]; the (1 - I) super-graph is
    # generated inside the kernel, never materialized / DMA'd.
    feature = jnp.concatenate(
        [inputs.astype(jnp.float32), meta_v.astype(jnp.float32)], axis=0)

    w1 = params["w_heads"]                                    # (H, Fin, nhid)
    wa1, wa2, w2, wo1, wo2 = _prep_gat_params(
        w1, params["a1_heads"], params["a2_heads"],
        params["w_out"], params["a1_out"], params["a2_out"])
    nheads = w1.shape[0]

    kernel = functools.partial(metagraph_kernel, nheads=nheads, alpha=alpha,
                               batch_size=batch_size)
    vmem = pl.BlockSpec(memory_space=pltpu.MemorySpace.VMEM)

    rep, cm, ctm, cp = pl.pallas_call(
        kernel,
        out_shape=(jax.ShapeDtypeStruct((n, d), jnp.float32),
                   jax.ShapeDtypeStruct((1, 1), jnp.float32),
                   jax.ShapeDtypeStruct((1, 1), jnp.float32),
                   jax.ShapeDtypeStruct((1, 1), jnp.float32)),
        in_specs=[vmem] * 8,
        out_specs=(vmem, vmem, vmem, vmem),
    )(feature, buf, w1, wa1, wa2, w2, wo1, wo2)

    return (rep[:batch_size],
            rep[batch_size:2 * batch_size],
            rep[n - batch_size:],
            [cm[0, 0], ctm[0, 0], cp[0, 0]],
            new_buffer)


def init_params(key, hidden_dim, input_dim, nhid=8, nheads=8,
                meta_graph_vertex_num=4):
    """Deterministic parameter init mirroring the module's shapes."""
    ks = jax.random.split(key, 6)

    def xavier(k, shape, gain=1.414):
        fan_in, fan_out = shape[-2], shape[-1]
        limit = gain * (6.0 / (fan_in + fan_out)) ** 0.5
        return jax.random.uniform(k, shape, jnp.float32, -limit, limit)

    # Per-head GAT params: W (hidden_dim, nhid), a (2*nhid, 1) split into a1/a2.
    w_heads = xavier(ks[0], (nheads, hidden_dim, nhid))
    a_heads = xavier(ks[1], (nheads, 2 * nhid, 1))
    a1_heads = a_heads[:, :nhid, 0]                       # (nheads, nhid)
    a2_heads = a_heads[:, nhid:, 0]                       # (nheads, nhid)

    # Output GAT layer: W (nhid*nheads, input_dim), a (2*input_dim, 1).
    w_out = xavier(ks[2], (nhid * nheads, input_dim))
    a_out = xavier(ks[3], (2 * input_dim, 1))
    a1_out = a_out[:input_dim, 0][None, :]                # (1, input_dim)
    a2_out = a_out[input_dim:, 0][None, :]                # (1, input_dim)

    meta_graph_vertex = jax.random.uniform(
        ks[4], (meta_graph_vertex_num, input_dim), jnp.float32)
    meta_graph_vertex_buffer = jax.random.uniform(
        ks[5], (meta_graph_vertex_num, input_dim), jnp.float32)

    return dict(w_heads=w_heads, a1_heads=a1_heads, a2_heads=a2_heads,
                w_out=w_out, a1_out=a1_out, a2_out=a2_out,
                meta_graph_vertex=meta_graph_vertex,
                meta_graph_vertex_buffer=meta_graph_vertex_buffer)
    # Note: adj_mlp / gate_mlp (self.distance / self.gate) are never used in
    # this forward pass (only *_samegraph / *_crossgraph are called), so they
    # are not materialized.


if __name__ == "__main__":
    key = jax.random.PRNGKey(0)
    k_param, k_in = jax.random.split(key)

    # Small shapes consistent with the module: hidden_dim == input_dim is
    # required for GAT(nfeat=hidden_dim) to consume the input_dim features.
    hidden_dim = input_dim = 32
    batch_size = 4                      # inputs has 2 * batch_size rows
    meta_graph_vertex_num = 4           # == batch_size so the transfer-meta
                                        # cosine similarity is shape-compatible

    params = init_params(k_param, hidden_dim, input_dim,
                         nhid=8, nheads=8,
                         meta_graph_vertex_num=meta_graph_vertex_num)
    inputs = jax.random.normal(k_in, (2 * batch_size, input_dim), jnp.float32)

    fwd = jax.jit(metagraph_fd_forward)
    out = fwd(inputs, params)
    jax.block_until_ready(out)

    r0, r1, r2, corrs, _ = out
    assert r0.shape == (batch_size, input_dim)
    assert r1.shape == (batch_size, input_dim)
    assert r2.shape == (batch_size, input_dim)
    assert len(corrs) == 3
    print("KERNEL_OK")
</pallas_src>

<mosaic_0001>
module attributes {stable_mosaic.version = 11 : i64} {
  func.func @metagraph_kernel(%arg0: memref<12x32xf32, #tpu.memory_space<vmem>>, %arg1: memref<4x32xf32, #tpu.memory_space<vmem>>, %arg2: memref<8x32x8xf32, #tpu.memory_space<vmem>>, %arg3: memref<8x32x1xf32, #tpu.memory_space<vmem>>, %arg4: memref<8x1x32xf32, #tpu.memory_space<vmem>>, %arg5: memref<8x8x32xf32, #tpu.memory_space<vmem>>, %arg6: memref<8x8x1xf32, #tpu.memory_space<vmem>>, %arg7: memref<8x1x8xf32, #tpu.memory_space<vmem>>, %arg8: memref<12x32xf32, #tpu.memory_space<vmem>>, %arg9: memref<1x1xf32, #tpu.memory_space<vmem>>, %arg10: memref<1x1xf32, #tpu.memory_space<vmem>>, %arg11: memref<1x1xf32, #tpu.memory_space<vmem>>) attributes {dimension_semantics = [], scalar_prefetch = 0 : i64, scratch_operands = 0 : i64, tpu.core_type = #tpu.core_type<tc>} {
    %c0 = arith.constant 0 : index
    %c0_0 = arith.constant 0 : index
    %0 = vector.load %arg0[%c0, %c0_0] : memref<12x32xf32, #tpu.memory_space<vmem>>, vector<12x32xf32>
    %1 = tpu.iota {dimensions = array<i32: 0>} : vector<12x12xi32>
    %2 = tpu.iota {dimensions = array<i32: 1>} : vector<12x12xi32>
    %3 = arith.cmpi ne, %1, %2 : vector<12x12xi32>
    %4 = vector.shape_cast %0 : vector<12x32xf32> to vector<1x12x32xf32>
    %5 = vector.shape_cast %4 : vector<1x12x32xf32> to vector<1x12x32xf32>
    %6 = vector.broadcast %5 : vector<1x12x32xf32> to vector<8x12x32xf32>
    %c0_1 = arith.constant 0 : index
    %c0_2 = arith.constant 0 : index
    %c0_3 = arith.constant 0 : index
    %7 = vector.load %arg2[%c0_1, %c0_2, %c0_3] : memref<8x32x8xf32, #tpu.memory_space<vmem>>, vector<8x32x8xf32>
    "tpu.trace_start"() <{level = 10 : i32, message = "hnf,hfo->hno"}> : () -> ()
    %cst = arith.constant dense<0.000000e+00> : vector<8x12x8xf32>
    %8 = tpu.matmul %6, %7, %cst {dimension_numbers = #tpu.dot_dimension_numbers<[2], [1], [1], [2], [0, 0, 0, 1, 1, 2], [0], [0]>} : vector<8x12x32xf32>, vector<8x32x8xf32>, vector<8x12x8xf32> -> vector<8x12x8xf32>
    "tpu.trace_stop"() : () -> ()
    %c0_4 = arith.constant 0 : index
    %c0_5 = arith.constant 0 : index
    %c0_6 = arith.constant 0 : index
    %9 = vector.load %arg3[%c0_4, %c0_5, %c0_6] : memref<8x32x1xf32, #tpu.memory_space<vmem>>, vector<8x32x1xf32>
    "tpu.trace_start"() <{level = 10 : i32, message = "hnf,hfo->hno"}> : () -> ()
    %cst_7 = arith.constant dense<0.000000e+00> : vector<8x12x1xf32>
    %10 = tpu.matmul %6, %9, %cst_7 {dimension_numbers = #tpu.dot_dimension_numbers<[2], [1], [1], [2], [0, 0, 0, 1, 1, 2], [0], [0]>} : vector<8x12x32xf32>, vector<8x32x1xf32>, vector<8x12x1xf32> -> vector<8x12x1xf32>
    "tpu.trace_stop"() : () -> ()
    %c0_8 = arith.constant 0 : index
    %c0_9 = arith.constant 0 : index
    %c0_10 = arith.constant 0 : index
    %11 = vector.load %arg4[%c0_8, %c0_9, %c0_10] : memref<8x1x32xf32, #tpu.memory_space<vmem>>, vector<8x1x32xf32>
    "tpu.trace_start"() <{level = 10 : i32, message = "hqf,hnf->hqn"}> : () -> ()
    %cst_11 = arith.constant dense<0.000000e+00> : vector<8x1x12xf32>
    %12 = tpu.matmul %11, %6, %cst_11 {dimension_numbers = #tpu.dot_dimension_numbers<[2], [2], [1], [1], [0, 0, 0, 1, 1, 1], [0], [0]>} : vector<8x1x32xf32>, vector<8x12x32xf32>, vector<8x1x12xf32> -> vector<8x1x12xf32>
    "tpu.trace_stop"() : () -> ()
    %13 = vector.broadcast %10 : vector<8x12x1xf32> to vector<8x12x12xf32>
    %14 = vector.broadcast %12 : vector<8x1x12xf32> to vector<8x12x12xf32>
    %15 = arith.addf %13, %14 : vector<8x12x12xf32>
    %cst_12 = arith.constant 0.000000e+00 : f32
    %16 = vector.broadcast %cst_12 : f32 to vector<8x12x12xf32>
    %17 = arith.cmpf ogt, %15, %16 : vector<8x12x12xf32>
    %cst_13 = arith.constant 2.000000e-01 : f32
    %18 = vector.broadcast %cst_13 : f32 to vector<8x12x12xf32>
    %19 = arith.mulf %18, %15 : vector<8x12x12xf32>
    %20 = arith.select %17, %15, %19 : vector<8x12x12xi1>, vector<8x12x12xf32>
    %21 = vector.shape_cast %3 : vector<12x12xi1> to vector<1x12x12xi1>
    %cst_14 = arith.constant -9.000000e+15 : f32
    %22 = vector.shape_cast %21 : vector<1x12x12xi1> to vector<1x12x12xi1>
    %23 = vector.broadcast %22 : vector<1x12x12xi1> to vector<8x12x12xi1>
    %24 = vector.broadcast %cst_14 : f32 to vector<8x12x12xf32>
    %25 = arith.select %23, %20, %24 : vector<8x12x12xi1>, vector<8x12x12xf32>
    %cst_15 = arith.constant dense<0xFF800000> : vector<8x12xf32>
    %26 = vector.multi_reduction <maximumf>, %25, %cst_15 [2] : vector<8x12x12xf32> to vector<8x12xf32>
    %27 = vector.shape_cast %26 : vector<8x12xf32> to vector<8x12x1xf32>
    %28 = vector.broadcast %27 : vector<8x12x1xf32> to vector<8x12x12xf32>
    %29 = arith.subf %25, %28 : vector<8x12x12xf32>
    %30 = math.exp %29 : vector<8x12x12xf32>
    %cst_16 = arith.constant dense<0.000000e+00> : vector<8x12xf32>
    %31 = vector.multi_reduction <add>, %30, %cst_16 [2] : vector<8x12x12xf32> to vector<8x12xf32>
    %32 = vector.shape_cast %31 : vector<8x12xf32> to vector<8x12x1xf32>
    %33 = tpu.reciprocal %32 {approx = true} : vector<8x12x1xf32> -> vector<8x12x1xf32>
    %34 = vector.broadcast %33 : vector<8x12x1xf32> to vector<8x12x12xf32>
    %35 = arith.mulf %30, %34 : vector<8x12x12xf32>
    "tpu.trace_start"() <{level = 10 : i32, message = "hij,hjf->hif"}> : () -> ()
    %cst_17 = arith.constant dense<0.000000e+00> : vector<8x12x8xf32>
    %36 = tpu.matmul %35, %8, %cst_17 {dimension_numbers = #tpu.dot_dimension_numbers<[2], [1], [1], [2], [0, 0, 0, 1, 1, 2], [0], [0]>} : vector<8x12x12xf32>, vector<8x12x8xf32>, vector<8x12x8xf32> -> vector<8x12x8xf32>
    %cst_18 = arith.constant 0.000000e+00 : f32
    "tpu.trace_stop"() : () -> ()
    %37 = vector.broadcast %cst_18 : f32 to vector<8x12x8xf32>
    %38 = arith.cmpf ogt, %36, %37 : vector<8x12x8xf32>
    %cst_19 = arith.constant 0.000000e+00 : f32
    %39 = vector.broadcast %cst_19 : f32 to vector<8x12x8xf32>
    %40 = arith.minimumf %36, %39 : vector<8x12x8xf32>
    %41 = math.exp %40 : vector<8x12x8xf32>
    %cst_20 = arith.constant 1.000000e+00 : f32
    %42 = vector.broadcast %cst_20 : f32 to vector<8x12x8xf32>
    %43 = arith.subf %41, %42 : vector<8x12x8xf32>
    %44 = arith.select %38, %36, %43 : vector<8x12x8xi1>, vector<8x12x8xf32>
    %c0_21 = arith.constant 0 : index
    %c0_22 = arith.constant 0 : index
    %c0_23 = arith.constant 0 : index
    %45 = vector.load %arg5[%c0_21, %c0_22, %c0_23] : memref<8x8x32xf32, #tpu.memory_space<vmem>>, vector<8x8x32xf32>
    "tpu.trace_start"() <{level = 10 : i32, message = "hnf,hfo->hno"}> : () -> ()
    %cst_24 = arith.constant dense<0.000000e+00> : vector<8x12x32xf32>
    %46 = tpu.matmul %44, %45, %cst_24 {dimension_numbers = #tpu.dot_dimension_numbers<[2], [1], [1], [2], [0, 0, 0, 1, 1, 2], [0], [0]>} : vector<8x12x8xf32>, vector<8x8x32xf32>, vector<8x12x32xf32> -> vector<8x12x32xf32>
    "tpu.trace_stop"() : () -> ()
    %cst_25 = arith.constant dense<0.000000e+00> : vector<12x32xf32>
    %47 = vector.multi_reduction <add>, %46, %cst_25 [0] : vector<8x12x32xf32> to vector<12x32xf32>
    %c0_26 = arith.constant 0 : index
    %c0_27 = arith.constant 0 : index
    %c0_28 = arith.constant 0 : index
    %48 = vector.load %arg6[%c0_26, %c0_27, %c0_28] : memref<8x8x1xf32, #tpu.memory_space<vmem>>, vector<8x8x1xf32>
    "tpu.trace_start"() <{level = 10 : i32, message = "hnf,hfo->hno"}> : () -> ()
    %cst_29 = arith.constant dense<0.000000e+00> : vector<8x12x1xf32>
    %49 = tpu.matmul %44, %48, %cst_29 {dimension_numbers = #tpu.dot_dimension_numbers<[2], [1], [1], [2], [0, 0, 0, 1, 1, 2], [0], [0]>} : vector<8x12x8xf32>, vector<8x8x1xf32>, vector<8x12x1xf32> -> vector<8x12x1xf32>
    "tpu.trace_stop"() : () -> ()
    %cst_30 = arith.constant dense<0.000000e+00> : vector<12x1xf32>
    %50 = vector.multi_reduction <add>, %49, %cst_30 [0] : vector<8x12x1xf32> to vector<12x1xf32>
    %c0_31 = arith.constant 0 : index
    %c0_32 = arith.constant 0 : index
    %c0_33 = arith.constant 0 : index
    %51 = vector.load %arg7[%c0_31, %c0_32, %c0_33] : memref<8x1x8xf32, #tpu.memory_space<vmem>>, vector<8x1x8xf32>
    "tpu.trace_start"() <{level = 10 : i32, message = "hqf,hnf->hqn"}> : () -> ()
    %cst_34 = arith.constant dense<0.000000e+00> : vector<8x1x12xf32>
    %52 = tpu.matmul %51, %44, %cst_34 {dimension_numbers = #tpu.dot_dimension_numbers<[2], [2], [1], [1], [0, 0, 0, 1, 1, 1], [0], [0]>} : vector<8x1x8xf32>, vector<8x12x8xf32>, vector<8x1x12xf32> -> vector<8x1x12xf32>
    "tpu.trace_stop"() : () -> ()
    %cst_35 = arith.constant dense<0.000000e+00> : vector<1x12xf32>
    %53 = vector.multi_reduction <add>, %52, %cst_35 [0] : vector<8x1x12xf32> to vector<1x12xf32>
    %54 = vector.broadcast %50 : vector<12x1xf32> to vector<12x12xf32>
    %55 = vector.broadcast %53 : vector<1x12xf32> to vector<12x12xf32>
    %56 = arith.addf %54, %55 : vector<12x12xf32>
    %cst_36 = arith.constant 0.000000e+00 : f32
    %57 = vector.broadcast %cst_36 : f32 to vector<12x12xf32>
    %58 = arith.cmpf ogt, %56, %57 : vector<12x12xf32>
    %cst_37 = arith.constant 2.000000e-01 : f32
    %59 = vector.broadcast %cst_37 : f32 to vector<12x12xf32>
    %60 = arith.mulf %59, %56 : vector<12x12xf32>
    %61 = arith.select %58, %56, %60 : vector<12x12xi1>, vector<12x12xf32>
    %cst_38 = arith.constant -9.000000e+15 : f32
    %62 = vector.broadcast %cst_38 : f32 to vector<12x12xf32>
    %63 = arith.select %3, %61, %62 : vector<12x12xi1>, vector<12x12xf32>
    %cst_39 = arith.constant dense<0xFF800000> : vector<12xf32>
    %64 = vector.multi_reduction <maximumf>, %63, %cst_39 [1] : vector<12x12xf32> to vector<12xf32>
    %65 = vector.shape_cast %64 : vector<12xf32> to vector<12x1xf32>
    %66 = vector.broadcast %65 : vector<12x1xf32> to vector<12x12xf32>
    %67 = arith.subf %63, %66 : vector<12x12xf32>
    %68 = math.exp %67 : vector<12x12xf32>
    %cst_40 = arith.constant dense<0.000000e+00> : vector<12xf32>
    %69 = vector.multi_reduction <add>, %68, %cst_40 [1] : vector<12x12xf32> to vector<12xf32>
    %70 = vector.shape_cast %69 : vector<12xf32> to vector<12x1xf32>
    %71 = tpu.reciprocal %70 {approx = true} : vector<12x1xf32> -> vector<12x1xf32>
    %72 = vector.broadcast %71 : vector<12x1xf32> to vector<12x12xf32>
    %73 = arith.mulf %68, %72 : vector<12x12xf32>
    %cst_41 = arith.constant dense<0.000000e+00> : vector<12x32xf32>
    %74 = tpu.matmul %73, %47, %cst_41 {dimension_numbers = #tpu.dot_dimension_numbers<[1], [0], [0], [1], [0, 0, 1, 1], [], []>} : vector<12x12xf32>, vector<12x32xf32>, vector<12x32xf32> -> vector<12x32xf32>
    %cst_42 = arith.constant 0.000000e+00 : f32
    %75 = vector.broadcast %cst_42 : f32 to vector<12x32xf32>
    %76 = arith.cmpf ogt, %74, %75 : vector<12x32xf32>
    %cst_43 = arith.constant 0.000000e+00 : f32
    %77 = vector.broadcast %cst_43 : f32 to vector<12x32xf32>
    %78 = arith.minimumf %74, %77 : vector<12x32xf32>
    %79 = math.exp %78 : vector<12x32xf32>
    %cst_44 = arith.constant 1.000000e+00 : f32
    %80 = vector.broadcast %cst_44 : f32 to vector<12x32xf32>
    %81 = arith.subf %79, %80 : vector<12x32xf32>
    %82 = arith.select %76, %74, %81 : vector<12x32xi1>, vector<12x32xf32>
    %cst_45 = arith.constant dense<0xFF800000> : vector<12xf32>
    %83 = vector.multi_reduction <maximumf>, %82, %cst_45 [1] : vector<12x32xf32> to vector<12xf32>
    %84 = vector.shape_cast %83 : vector<12xf32> to vector<12x1xf32>
    %85 = vector.broadcast %84 : vector<12x1xf32> to vector<12x32xf32>
    %86 = arith.subf %82, %85 : vector<12x32xf32>
    %87 = math.exp %86 : vector<12x32xf32>
    %cst_46 = arith.constant dense<0.000000e+00> : vector<12xf32>
    %88 = vector.multi_reduction <add>, %87, %cst_46 [1] : vector<12x32xf32> to vector<12xf32>
    %89 = vector.shape_cast %88 : vector<12xf32> to vector<12x1xf32>
    %90 = math.log %89 : vector<12x1xf32>
    %91 = vector.broadcast %90 : vector<12x1xf32> to vector<12x32xf32>
    %92 = arith.subf %86, %91 : vector<12x32xf32>
    %c0_47 = arith.constant 0 : index
    %c0_48 = arith.constant 0 : index
    %93 = vector.load %arg1[%c0_47, %c0_48] : memref<4x32xf32, #tpu.memory_space<vmem>>, vector<4x32xf32>
    %94 = vector.extract_strided_slice %0 {offsets = [8, 0], sizes = [4, 32], strides = [1, 1]} : vector<12x32xf32> to vector<4x32xf32>
    %95 = arith.mulf %93, %94 : vector<4x32xf32>
    %cst_49 = arith.constant dense<0.000000e+00> : vector<4xf32>
    %96 = vector.multi_reduction <add>, %95, %cst_49 [1] : vector<4x32xf32> to vector<4xf32>
    %97 = vector.shape_cast %96 : vector<4xf32> to vector<4x1xf32>
    %98 = arith.mulf %93, %93 : vector<4x32xf32>
    %cst_50 = arith.constant dense<0.000000e+00> : vector<4xf32>
    %99 = vector.multi_reduction <add>, %98, %cst_50 [1] : vector<4x32xf32> to vector<4xf32>
    %100 = vector.shape_cast %99 : vector<4xf32> to vector<4x1xf32>
    %101 = math.sqrt %100 : vector<4x1xf32>
    %102 = arith.mulf %94, %94 : vector<4x32xf32>
    %cst_51 = arith.constant dense<0.000000e+00> : vector<4xf32>
    %103 = vector.multi_reduction <add>, %102, %cst_51 [1] : vector<4x32xf32> to vector<4xf32>
    %104 = vector.shape_cast %103 : vector<4xf32> to vector<4x1xf32>
    %105 = math.sqrt %104 : vector<4x1xf32>
    %106 = arith.mulf %101, %105 : vector<4x1xf32>
    %cst_52 = arith.constant 9.99999993E-9 : f32
    %107 = vector.broadcast %cst_52 : f32 to vector<4x1xf32>
    %108 = arith.maximumf %106, %107 : vector<4x1xf32>
    %109 = tpu.reciprocal %108 {approx = true} : vector<4x1xf32> -> vector<4x1xf32>
    %110 = arith.mulf %97, %109 : vector<4x1xf32>
    %cst_53 = arith.constant dense<0.000000e+00> : vector<1xf32>
    %111 = vector.multi_reduction <add>, %110, %cst_53 [0] : vector<4x1xf32> to vector<1xf32>
    %112 = vector.shape_cast %111 : vector<1xf32> to vector<1x1xf32>
    %cst_54 = arith.constant 2.500000e-01 : f32
    %113 = vector.broadcast %cst_54 : f32 to vector<1x1xf32>
    %114 = arith.mulf %112, %113 : vector<1x1xf32>
    %c0_55 = arith.constant 0 : index
    %c0_56 = arith.constant 0 : index
    %115 = vector.load %arg9[%c0_55, %c0_56] : memref<1x1xf32, #tpu.memory_space<vmem>>, vector<1x1xf32>
    tpu.vector_store %arg9[%c0_55, %c0_56], %114 {strides = array<i32>} : memref<1x1xf32, #tpu.memory_space<vmem>>, vector<1x1xf32>,
    %116 = vector.extract_strided_slice %92 {offsets = [8, 0], sizes = [4, 32], strides = [1, 1]} : vector<12x32xf32> to vector<4x32xf32>
    %117 = arith.mulf %116, %94 : vector<4x32xf32>
    %cst_57 = arith.constant dense<0.000000e+00> : vector<4xf32>
    %118 = vector.multi_reduction <add>, %117, %cst_57 [1] : vector<4x32xf32> to vector<4xf32>
    %119 = vector.shape_cast %118 : vector<4xf32> to vector<4x1xf32>
    %120 = arith.mulf %116, %116 : vector<4x32xf32>
    %cst_58 = arith.constant dense<0.000000e+00> : vector<4xf32>
    %121 = vector.multi_reduction <add>, %120, %cst_58 [1] : vector<4x32xf32> to vector<4xf32>
    %122 = vector.shape_cast %121 : vector<4xf32> to vector<4x1xf32>
    %123 = math.sqrt %122 : vector<4x1xf32>
    %124 = arith.mulf %94, %94 : vector<4x32xf32>
    %cst_59 = arith.constant dense<0.000000e+00> : vector<4xf32>
    %125 = vector.multi_reduction <add>, %124, %cst_59 [1] : vector<4x32xf32> to vector<4xf32>
    %126 = vector.shape_cast %125 : vector<4xf32> to vector<4x1xf32>
    %127 = math.sqrt %126 : vector<4x1xf32>
    %128 = arith.mulf %123, %127 : vector<4x1xf32>
    %cst_60 = arith.constant 9.99999993E-9 : f32
    %129 = vector.broadcast %cst_60 : f32 to vector<4x1xf32>
    %130 = arith.maximumf %128, %129 : vector<4x1xf32>
    %131 = tpu.reciprocal %130 {approx = true} : vector<4x1xf32> -> vector<4x1xf32>
    %132 = arith.mulf %119, %131 : vector<4x1xf32>
    %cst_61 = arith.constant dense<0.000000e+00> : vector<1xf32>
    %133 = vector.multi_reduction <add>, %132, %cst_61 [0] : vector<4x1xf32> to vector<1xf32>
    %134 = vector.shape_cast %133 : vector<1xf32> to vector<1x1xf32>
    %cst_62 = arith.constant 2.500000e-01 : f32
    %135 = vector.broadcast %cst_62 : f32 to vector<1x1xf32>
    %136 = arith.mulf %134, %135 : vector<1x1xf32>
    %c0_63 = arith.constant 0 : index
    %c0_64 = arith.constant 0 : index
    %137 = vector.load %arg10[%c0_63, %c0_64] : memref<1x1xf32, #tpu.memory_space<vmem>>, vector<1x1xf32>
    tpu.vector_store %arg10[%c0_63, %c0_64], %136 {strides = array<i32>} : memref<1x1xf32, #tpu.memory_space<vmem>>, vector<1x1xf32>,
    %138 = vector.extract_strided_slice %92 {offsets = [0, 0], sizes = [8, 32], strides = [1, 1]} : vector<12x32xf32> to vector<8x32xf32>
    %139 = vector.extract_strided_slice %0 {offsets = [0, 0], sizes = [8, 32], strides = [1, 1]} : vector<12x32xf32> to vector<8x32xf32>
    %140 = arith.mulf %138, %139 : vector<8x32xf32>
    %cst_65 = arith.constant dense<0.000000e+00> : vector<8xf32>
    %141 = vector.multi_reduction <add>, %140, %cst_65 [1] : vector<8x32xf32> to vector<8xf32>
    %142 = vector.shape_cast %141 : vector<8xf32> to vector<8x1xf32>
    %143 = arith.mulf %138, %138 : vector<8x32xf32>
    %cst_66 = arith.constant dense<0.000000e+00> : vector<8xf32>
    %144 = vector.multi_reduction <add>, %143, %cst_66 [1] : vector<8x32xf32> to vector<8xf32>
    %145 = vector.shape_cast %144 : vector<8xf32> to vector<8x1xf32>
    %146 = math.sqrt %145 : vector<8x1xf32>
    %147 = arith.mulf %139, %139 : vector<8x32xf32>
    %cst_67 = arith.constant dense<0.000000e+00> : vector<8xf32>
    %148 = vector.multi_reduction <add>, %147, %cst_67 [1] : vector<8x32xf32> to vector<8xf32>
    %149 = vector.shape_cast %148 : vector<8xf32> to vector<8x1xf32>
    %150 = math.sqrt %149 : vector<8x1xf32>
    %151 = arith.mulf %146, %150 : vector<8x1xf32>
    %cst_68 = arith.constant 9.99999993E-9 : f32
    %152 = vector.broadcast %cst_68 : f32 to vector<8x1xf32>
    %153 = arith.maximumf %151, %152 : vector<8x1xf32>
    %154 = tpu.reciprocal %153 {approx = true} : vector<8x1xf32> -> vector<8x1xf32>
    %155 = arith.mulf %142, %154 : vector<8x1xf32>
    %cst_69 = arith.constant dense<0.000000e+00> : vector<1xf32>
    %156 = vector.multi_reduction <add>, %155, %cst_69 [0] : vector<8x1xf32> to vector<1xf32>
    %157 = vector.shape_cast %156 : vector<1xf32> to vector<1x1xf32>
    %cst_70 = arith.constant 1.250000e-01 : f32
    %158 = vector.broadcast %cst_70 : f32 to vector<1x1xf32>
    %159 = arith.mulf %157, %158 : vector<1x1xf32>
    %c0_71 = arith.constant 0 : index
    %c0_72 = arith.constant 0 : index
    %160 = vector.load %arg11[%c0_71, %c0_72] : memref<1x1xf32, #tpu.memory_space<vmem>>, vector<1x1xf32>
    tpu.vector_store %arg11[%c0_71, %c0_72], %159 {strides = array<i32>} : memref<1x1xf32, #tpu.memory_space<vmem>>, vector<1x1xf32>,
    %c0_73 = arith.constant 0 : index
    %c0_74 = arith.constant 0 : index
    %161 = vector.load %arg8[%c0_73, %c0_74] : memref<12x32xf32, #tpu.memory_space<vmem>>, vector<12x32xf32>
    tpu.vector_store %arg8[%c0_73, %c0_74], %92 {strides = array<i32>} : memref<12x32xf32, #tpu.memory_space<vmem>>, vector<12x32xf32>,
    return
  }
}

</mosaic_0001>

<bundles_post_ra>
// kernel: metagraph_fd_forward.1
= control target key start
LH: loop header
LB: loop body
LE: loop exit
PB: predicated region body
PF: predicated region fallthrough
CT: control target
= control target key end

     0   :  { %17 = vsyncpa [#allocation3], 0  ;;  %vm76_vm0 = vcmask 261120   ;;  %s7755_s0 = inlined_call_operand.vmem [shape: f32[12,32], index: 0, kind: input, shape index: {}]   ;;  %s7756_s1 = inlined_call_operand.vmem [shape: f32[4,32], index: 1, kind: input, shape index: {}]   ;;  %s7757_s2 = inlined_call_operand.vmem [shape: f32[8,32,8], index: 2, kind: input, shape index: {}]   ;;  %s7758_s3 = inlined_call_operand.vmem [shape: f32[8,32,1], index: 3, kind: input, shape index: {}]   ;;  %s7759_s4 = inlined_call_operand.vmem [shape: f32[8,1,32], index: 4, kind: input, shape index: {}]   ;;  %s7760_s5 = inlined_call_operand.vmem [shape: f32[8,8,32], index: 5, kind: input, shape index: {}]   ;;  %s7761_s6 = inlined_call_operand.vmem [shape: f32[8,8,1], index: 6, kind: input, shape index: {}]   ;;  %s7762_s7 = inlined_call_operand.vmem [shape: f32[8,1,8], index: 7, kind: input, shape index: {}]   ;;  %s7763_s8 = inlined_call_operand.vmem [shape: f32[12,32], index: 8, kind: output, shape index: {0}]   ;;  %s7764_s9 = inlined_call_operand.hbm [shape: f32[1,1], index: 9, kind: output, shape index: {1}]   ;;  %s7765_s10 = inlined_call_operand.hbm [shape: f32[1,1], index: 10, kind: output, shape index: {2}]   ;;  %s7766_s11 = inlined_call_operand.hbm [shape: f32[1,1], index: 11, kind: output, shape index: {3}]  }
   0x1   :  { %v44_v0 = vld [vmem:[%s7757_s2] sm:$0xff]  ;;  %v45_v1 = vld [vmem:[%s7757_s2 + $0x8] sm:$0xff]  ;;  %v46_v5 = vld [vmem:[%s7757_s2 + $0x10] sm:$0xff] }
   0x2   :  { %v48_v2 = vld [vmem:[%s7757_s2 + $0x20] sm:$0xff]  ;;  %v6122_v3 = vpack.c.bf16 %v45_v1, %v44_v0  ;;  %v49_v4 = vld [vmem:[%s7757_s2 + $0x28] sm:$0xff]  ;;  %v47_v6 = vld [vmem:[%s7757_s2 + $0x18] sm:$0xff] }
   0x3   :  { %v6130_v7 = vpack.c.bf16 %v49_v4, %v48_v2  ;;  %v6126_v8 = vpack.c.bf16 %v47_v6, %v46_v5  ;;  %v50_v9 = vld [vmem:[%s7757_s2 + $0x30] sm:$0xff]  ;;  %v51_v10 = vld [vmem:[%s7757_s2 + $0x38] sm:$0xff]  ;;  %v6677_v11 = vld [vmem:[%s7755_s0] sm:$0xff] }
   0x4   :  { %6123 = vmatprep.subr.bf16.mxu0 %v6122_v3  ;;  %v6134_v12 = vpack.c.bf16 %v51_v10, %v50_v9  ;;  %5699 = vmatprep.mubr.msk.f32.mxu0 %vm76_vm0, %v6677_v11  ;;  %v52_v13 = vld [vmem:[%s7757_s2 + $0x40] sm:$0xff]  ;;  %v53_v14 = vld [vmem:[%s7757_s2 + $0x48] sm:$0xff]  ;;  %v54_v19 = vld [vmem:[%s7757_s2 + $0x50] sm:$0xff] }
   0x5   :  { %6131 = vmatprep.subr.bf16.mxu1 %v6130_v7  ;;  %6125 = vmatpush3.bf16.msra.mxu0 %v6122_v3  ;;  %v56_v15 = vld [vmem:[%s7757_s2 + $0x60] sm:$0xff]  ;;  %v57_v16 = vld [vmem:[%s7757_s2 + $0x68] sm:$0xff]  ;;  %v6138_v17 = vpack.c.bf16 %v53_v14, %v52_v13  ;;  %v55_v20 = vld [vmem:[%s7757_s2 + $0x58] sm:$0xff] }
   0x6   :  { %6133 = vmatpush3.bf16.msra.mxu1 %v6130_v7  ;;  %6127 = vmatprep.subr.bf16.mxu0 %v6126_v8  ;;  %v6146_v18 = vpack.c.bf16 %v57_v16, %v56_v15  ;;  %v58_v21 = vld [vmem:[%s7757_s2 + $0x70] sm:$0xff]  ;;  %v59_v22 = vld [vmem:[%s7757_s2 + $0x78] sm:$0xff]  ;;  %v6710_v23 = vld [vmem:[%s7755_s0 + $0x8] sm:$0xf]  ;;  %v6142_v24 = vpack.c.bf16 %v55_v20, %v54_v19 }
   0x7   :  { %6135 = vmatprep.subr.bf16.mxu1 %v6134_v12  ;;  %5710 = vmatprep.mubr.msk.f32.mxu1 %vm76_vm0, %v6677_v11  ;;  %v6150_v25 = vpack.c.bf16 %v59_v22, %v58_v21  ;;  %v60_v26 = vld [vmem:[%s7757_s2 + $0x80] sm:$0xff]  ;;  %v61_v27 = vld [vmem:[%s7757_s2 + $0x88] sm:$0xff]  ;;  %v62_v32 = vld [vmem:[%s7757_s2 + $0x90] sm:$0xff] }
   0x8   :  { %v64_v28 = vld [vmem:[%s7757_s2 + $0xa0] sm:$0xff]  ;;  %v65_v29 = vld [vmem:[%s7757_s2 + $0xa8] sm:$0xff]  ;;  %v6154_v30 = vpack.c.bf16 %v61_v27, %v60_v26  ;;  %v63_v33 = vld [vmem:[%s7757_s2 + $0x98] sm:$0xff] }
   0x9   :  { %6129 = vmatpush3.bf16.msra.mxu0 %v6126_v8  ;;  %v6162_v31 = vpack.c.bf16 %v65_v29, %v64_v28  ;;  %v66_v34 = vld [vmem:[%s7757_s2 + $0xb0] sm:$0xff]  ;;  %v67_v35 = vld [vmem:[%s7757_s2 + $0xb8] sm:$0xff]  ;;  %v6158_v36 = vpack.c.bf16 %v63_v33, %v62_v32  ;;  %v68_v38 = vld [vmem:[%s7757_s2 + $0xc0] sm:$0xff] }
   0xa   :  { %6137 = vmatpush3.bf16.msra.mxu1 %v6134_v12  ;;  %6139 = vmatprep.subr.bf16.mxu0 %v6138_v17  ;;  %v6166_v37 = vpack.c.bf16 %v67_v35, %v66_v34  ;;  %v69_v39 = vld [vmem:[%s7757_s2 + $0xc8] sm:$0xff]  ;;  %v72_v40 = vld [vmem:[%s7757_s2 + $0xe0] sm:$0xff]  ;;  %v70_v44 = vld [vmem:[%s7757_s2 + $0xd0] sm:$0xff] }
   0xb   :  { %6147 = vmatprep.subr.bf16.mxu1 %v6146_v18  ;;  %v73_v41 = vld [vmem:[%s7757_s2 + $0xe8] sm:$0xff]  ;;  %v6170_v42 = vpack.c.bf16 %v69_v39, %v68_v38  ;;  %v71_v45 = vld [vmem:[%s7757_s2 + $0xd8] sm:$0xff]  ;;  %v74_v46 = vld [vmem:[%s7757_s2 + $0xf0] sm:$0xff] }
   0xc   :  { %5700 = vmatmul.mubr.msk.f32.vlgmr.msra.gmra.mrb[0].mxu0 %vm76_vm0, %v6710_v23  ;;  %v6178_v43 = vpack.c.bf16 %v73_v41, %v72_v40  ;;  %v75_v47 = vld [vmem:[%s7757_s2 + $0xf8] sm:$0xff]  ;;  %v6174_v48 = vpack.c.bf16 %v71_v45, %v70_v44 }
   0xd   :  { %5711 = vmatmul.mubr.msk.f32.vlgmr.msra.gmra.mrb[0].mxu1 %vm76_vm0, %v6710_v23  ;;  %6141 = vmatpush3.bf16.msra.mxu0 %v6138_v17 }
   0xe   :  { %6149 = vmatpush3.bf16.msra.mxu1 %v6146_v18  ;;  %6143 = vmatprep.subr.bf16.mxu0 %v6142_v24 }
   0xf   :  { %6151 = vmatprep.subr.bf16.mxu1 %v6150_v25  ;;  %5721 = vmatprep.mubr.msk.f32.mxu0 %vm76_vm0, %v6677_v11 }
  0x10   :  { %5732 = vmatprep.mubr.msk.f32.mxu1 %vm76_vm0, %v6677_v11 }
  0x11   :  { %6145 = vmatpush3.bf16.msra.mxu0 %v6142_v24 }
  0x12   :  { %6153 = vmatpush3.bf16.msra.mxu1 %v6150_v25  ;;  %6155 = vmatprep.subr.bf16.mxu0 %v6154_v30 }
  0x13   :  { %6163 = vmatprep.subr.bf16.mxu1 %v6162_v31 }
  0x14   :  { %5722 = vmatmul.mubr.msk.f32.vlgmr.msra.gmra.mrb[2].mxu0 %vm76_vm0, %v6710_v23 }
  0x15   :  { %5733 = vmatmul.mubr.msk.f32.vlgmr.msra.gmra.mrb[2].mxu1 %vm76_vm0, %v6710_v23  ;;  %6157 = vmatpush3.bf16.msra.mxu0 %v6154_v30 }
  0x16   :  { %6165 = vmatpush3.bf16.msra.mxu1 %v6162_v31  ;;  %6159 = vmatprep.subr.bf16.mxu0 %v6158_v36 }
  0x17   :  { %6167 = vmatprep.subr.bf16.mxu1 %v6166_v37  ;;  %5743 = vmatprep.mubr.msk.f32.mxu0 %vm76_vm0, %v6677_v11 }
  0x18   :  { %5754 = vmatprep.mubr.msk.f32.mxu1 %vm76_vm0, %v6677_v11 }
  0x19   :  { %6161 = vmatpush3.bf16.msra.mxu0 %v6158_v36 }
  0x1a   :  { %6169 = vmatpush3.bf16.msra.mxu1 %v6166_v37  ;;  %6171 = vmatprep.subr.bf16.mxu0 %v6170_v42 }
  0x1b   :  { %18 = vsyncpa [#allocation5], 0  ;;  %6179 = vmatprep.subr.bf16.mxu1 %v6178_v43  ;;  %v6182_v49 = vpack.c.bf16 %v75_v47, %v74_v46  ;;  %v683_v50 = vld [vmem:[%s7758_s3] sm:$0xff]  ;;  %v684_v51 = vld [vmem:[%s7758_s3 + $0x8] sm:$0xff]  ;;  %v6582_v36 = vmov 0.0|0.0   ;;  %vm6583_vm1 = vmmov 0   ;;  %v6251_v38 = vpack.c.bf16 %v6710_v23, %v6677_v11 }
  0x1c   :  { %5744 = vmatmul.mubr.msk.f32.vlgmr.msra.gmra.mrb[4].mxu0 %vm76_vm0, %v6710_v23  ;;  %v687_v52 = vld [vmem:[%s7758_s3 + $0x20] sm:$0xff]  ;;  %v688_v53 = vld [vmem:[%s7758_s3 + $0x28] sm:$0xff]  ;;  %v6186_v54 = vpack.c.bf16 %v684_v51, %v683_v50  ;;  %v685_v56 = vld [vmem:[%s7758_s3 + $0x10] sm:$0xff]  ;;  %v6584_v37 = vmov 0.0   ;;  %v6585_v46 = vmov 0   ;;  %vm2287_vm3 = vcmask 1043456  }
  0x1d   :  { %5755 = vmatmul.mubr.msk.f32.vlgmr.msra.gmra.mrb[4].mxu1 %vm76_vm0, %v6710_v23  ;;  %6173 = vmatpush3.bf16.msra.mxu0 %v6170_v42  ;;  %v6194_v55 = vpack.c.bf16 %v688_v53, %v687_v52  ;;  %v686_v57 = vld [vmem:[%s7758_s3 + $0x18] sm:$0xff]  ;;  %v689_v58 = vld [vmem:[%s7758_s3 + $0x30] sm:$0xff]  ;;  %v691_v62 = vld [vmem:[%s7758_s3 + $0x40] sm:$0xff]  ;;  %vm6586_vm4 = vmmov 1   ;;  %vm2107_vm9 = vcmask 93184   ;;  %vm2103_vm12 = vcmask 97280  }
  0x1e   :  { %6181 = vmatpush3.bf16.msra.mxu1 %v6178_v43  ;;  %6175 = vmatprep.subr.bf16.mxu0 %v6174_v48  ;;  %v690_v59 = vld [vmem:[%s7758_s3 + $0x38] sm:$0xff]  ;;  %v6190_v60 = vpack.c.bf16 %v686_v57, %v685_v56  ;;  %v692_v63 = vld [vmem:[%s7758_s3 + $0x48] sm:$0xff]  ;;  %v695_v0 = vld [vmem:[%s7758_s3 + $0x60] sm:$0xff] }
  0x1f   :  { %6183 = vmatprep.subr.bf16.mxu1 %v6182_v49  ;;  %5765 = vmatprep.mubr.msk.f32.mxu0 %vm76_vm0, %v6677_v11  ;;  %v6198_v61 = vpack.c.bf16 %v690_v59, %v689_v58  ;;  %v696_v1 = vld [vmem:[%s7758_s3 + $0x68] sm:$0xff]  ;;  %v6202_v2 = vpack.c.bf16 %v692_v63, %v691_v62  ;;  %v693_v3 = vld [vmem:[%s7758_s3 + $0x50] sm:$0xff]  ;;  %v694_v4 = vld [vmem:[%s7758_s3 + $0x58] sm:$0xff] }
  0x20   :  { %5776 = vmatprep.mubr.msk.f32.mxu1 %vm76_vm0, %v6677_v11  ;;  %v6210_v5 = vpack.c.bf16 %v696_v1, %v695_v0  ;;  %v697_v6 = vld [vmem:[%s7758_s3 + $0x70] sm:$0xff]  ;;  %v698_v7 = vld [vmem:[%s7758_s3 + $0x78] sm:$0xff]  ;;  %v6206_v8 = vpack.c.bf16 %v694_v4, %v693_v3  ;;  %v699_v10 = vld [vmem:[%s7758_s3 + $0x80] sm:$0xff]  ;;  %6377 = vset.pattern.permute.xlu1 %v6585_v46 }
  0x21   :  { %6177 = vmatpush3.bf16.msra.mxu0 %v6174_v48  ;;  %v6214_v9 = vpack.c.bf16 %v698_v7, %v697_v6  ;;  %v700_v12 = vld [vmem:[%s7758_s3 + $0x88] sm:$0xff]  ;;  %v703_v13 = vld [vmem:[%s7758_s3 + $0xa0] sm:$0xff]  ;;  %v701_v16 = vld [vmem:[%s7758_s3 + $0x90] sm:$0xff]  ;;  %6376 = vset.pattern.permute.xlu0 %v6585_v46 }
  0x22   :  { %6185 = vmatpush3.bf16.msra.mxu1 %v6182_v49  ;;  %6187 = vmatprep.subr.bf16.mxu0 %v6186_v54  ;;  %v704_v14 = vld [vmem:[%s7758_s3 + $0xa8] sm:$0xff]  ;;  %v6218_v15 = vpack.c.bf16 %v700_v12, %v699_v10  ;;  %v702_v17 = vld [vmem:[%s7758_s3 + $0x98] sm:$0xff]  ;;  %v705_v19 = vld [vmem:[%s7758_s3 + $0xb0] sm:$0xff] }
  0x23   :  { %6195 = vmatprep.subr.bf16.mxu1 %v6194_v55  ;;  %v6226_v18 = vpack.c.bf16 %v704_v14, %v703_v13  ;;  %v706_v20 = vld [vmem:[%s7758_s3 + $0xb8] sm:$0xff]  ;;  %v6222_v21 = vpack.c.bf16 %v702_v17, %v701_v16  ;;  %v707_v24 = vld [vmem:[%s7758_s3 + $0xc0] sm:$0xff]  ;;  %v708_v25 = vld [vmem:[%s7758_s3 + $0xc8] sm:$0xff] }
  0x24   :  { %5766 = vmatmul.mubr.msk.f32.vlgmr.msra.gmra.mrb[6].mxu0 %vm76_vm0, %v6710_v23  ;;  %v6230_v22 = vpack.c.bf16 %v706_v20, %v705_v19  ;;  %v711_v26 = vld [vmem:[%s7758_s3 + $0xe0] sm:$0xff]  ;;  %v712_v27 = vld [vmem:[%s7758_s3 + $0xe8] sm:$0xff]  ;;  %v6234_v28 = vpack.c.bf16 %v708_v25, %v707_v24  ;;  %v709_v29 = vld [vmem:[%s7758_s3 + $0xd0] sm:$0xff] }
  0x25   :  { %5777 = vmatmul.mubr.msk.f32.vlgmr.msra.gmra.mrb[6].mxu1 %vm76_vm0, %v6710_v23  ;;  %6189 = vmatpush3.bf16.msra.mxu0 %v6186_v54  ;;  %v710_v30 = vld [vmem:[%s7758_s3 + $0xd8] sm:$0xff]  ;;  %v6242_v31 = vpack.c.bf16 %v712_v27, %v711_v26  ;;  %v713_v32 = vld [vmem:[%s7758_s3 + $0xf0] sm:$0xff]  ;;  %vm6926_vm2 = vmpackc.low %vm76_vm0, %vm76_vm0 }
  0x26   :  { %6197 = vmatpush3.bf16.msra.mxu1 %v6194_v55  ;;  %6191 = vmatprep.subr.bf16.mxu0 %v6190_v60  ;;  %v714_v33 = vld [vmem:[%s7758_s3 + $0xf8] sm:$0xff]  ;;  %v6238_v34 = vpack.c.bf16 %v710_v30, %v709_v29  ;;  %v1317_v40 = vld [vmem:[%s7759_s4 + $0x2] sm:$0x1]  ;;  %v1318_v41 = vld [vmem:[%s7759_s4 + $0x3] sm:$0x1] }
  0x27   :  { %6199 = vmatprep.subr.bf16.mxu1 %v6198_v61  ;;  %5787 = vmatprep.mubr.msk.f32.mxu0 %vm76_vm0, %v6677_v11  ;;  %v6246_v35 = vpack.c.bf16 %v714_v33, %v713_v32  ;;  %v1319_v42 = vld [vmem:[%s7759_s4 + $0x4] sm:$0x1]  ;;  %v1320_v43 = vld [vmem:[%s7759_s4 + $0x5] sm:$0x1]  ;;  %v1321_v44 = vld [vmem:[%s7759_s4 + $0x6] sm:$0x1] }
  0x28   :  { %5798 = vmatprep.mubr.msk.f32.mxu1 %vm76_vm0, %v6677_v11  ;;  %v1322_v45 = vld [vmem:[%s7759_s4 + $0x7] sm:$0x1]  ;;  %vm6997_vm5 = vmpackc.low %vm2287_vm3, %vm6586_vm4 }
  0x29   :  { %6193 = vmatpush3.bf16.msra.mxu0 %v6190_v60 }
  0x2a   :  { %6201 = vmatpush3.bf16.msra.mxu1 %v6198_v61  ;;  %6203 = vmatprep.subr.bf16.mxu0 %v6202_v2 }
  0x2b   :  { %6211 = vmatprep.subr.bf16.mxu1 %v6210_v5 }
  0x2c   :  { %5788 = vmatmul.mubr.msk.f32.vlgmr.msra.gmra.mrb[8].mxu0 %vm76_vm0, %v6710_v23 }
  0x2d   :  { %5799 = vmatmul.mubr.msk.f32.vlgmr.msra.gmra.mrb[8].mxu1 %vm76_vm0, %v6710_v23  ;;  %6205 = vmatpush3.bf16.msra.mxu0 %v6202_v2 }
  0x2e   :  { %6207 = vmatprep.subr.bf16.mxu0 %v6206_v8  ;;  %6213 = vmatpush3.bf16.msra.mxu1 %v6210_v5 }
  0x2f   :  { %5809 = vmatprep.mubr.msk.f32.mxu0 %vm76_vm0, %v6677_v11  ;;  %6215 = vmatprep.subr.bf16.mxu1 %v6214_v9 }
  0x30   :  { %5820 = vmatprep.mubr.msk.f32.mxu1 %vm76_vm0, %v6677_v11 }
  0x31   :  { %6209 = vmatpush3.bf16.msra.mxu0 %v6206_v8 }
  0x32   :  { %6219 = vmatprep.subr.bf16.mxu0 %v6218_v15  ;;  %6217 = vmatpush3.bf16.msra.mxu1 %v6214_v9 }
  0x33   :  { %6227 = vmatprep.subr.bf16.mxu1 %v6226_v18 }
  0x34   :  { %5810 = vmatmul.mubr.msk.f32.vlgmr.msra.gmra.mrb[10].mxu0 %vm76_vm0, %v6710_v23 }
  0x35   :  { %6221 = vmatpush3.bf16.msra.mxu0 %v6218_v15  ;;  %5821 = vmatmul.mubr.msk.f32.vlgmr.msra.gmra.mrb[10].mxu1 %vm76_vm0, %v6710_v23 }
  0x36   :  { %6223 = vmatprep.subr.bf16.mxu0 %v6222_v21  ;;  %6229 = vmatpush3.bf16.msra.mxu1 %v6226_v18 }
  0x37   :  { %5831 = vmatprep.mubr.msk.f32.mxu0 %vm76_vm0, %v6677_v11  ;;  %6231 = vmatprep.subr.bf16.mxu1 %v6230_v22 }
  0x38   :  { %5842 = vmatprep.mubr.msk.f32.mxu1 %vm76_vm0, %v6677_v11 }
  0x39   :  { %6225 = vmatpush3.bf16.msra.mxu0 %v6222_v21 }
  0x3a   :  { %6235 = vmatprep.subr.bf16.mxu0 %v6234_v28  ;;  %6233 = vmatpush3.bf16.msra.mxu1 %v6230_v22 }
  0x3b   :  { %6243 = vmatprep.subr.bf16.mxu1 %v6242_v31 }
  0x3c   :  { %5832 = vmatmul.mubr.msk.f32.vlgmr.msra.gmra.mrb[12].mxu0 %vm76_vm0, %v6710_v23 }
  0x3d   :  { %6237 = vmatpush3.bf16.msra.mxu0 %v6234_v28  ;;  %5843 = vmatmul.mubr.msk.f32.vlgmr.msra.gmra.mrb[12].mxu1 %vm76_vm0, %v6710_v23 }
  0x3e   :  { %6239 = vmatprep.subr.bf16.mxu0 %v6238_v34  ;;  %6245 = vmatpush3.bf16.msra.mxu1 %v6242_v31 }
  0x3f   :  { %5853 = vmatprep.mubr.msk.f32.mxu0 %vm76_vm0, %v6677_v11  ;;  %6247 = vmatprep.subr.bf16.mxu1 %v6246_v35 }
  0x40   :  { %5864 = vmatprep.mubr.msk.f32.mxu1 %vm76_vm0, %v6677_v11  ;;  %v1315_v11 = vld [vmem:[%s7759_s4] sm:$0x1] }
  0x41   :  { %6241 = vmatpush3.bf16.msra.mxu0 %v6238_v34 }
  0x42   :  { %6249 = vmatpush3.bf16.msra.mxu1 %v6246_v35  ;;  %6250 = vmatprep.subr.bf16.mxu0 %v6582_v36 }
  0x43   :  { %6254 = vmatprep.subr.bf16.mxu1 %v6582_v36 }
  0x44   :  { %5854 = vmatmul.mubr.msk.f32.vlgmr.msra.gmra.mrb[14].mxu0 %vm76_vm0, %v6710_v23 }
  0x45   :  { %5865 = vmatmul.mubr.msk.f32.vlgmr.msra.gmra.mrb[14].mxu1 %vm76_vm0, %v6710_v23  ;;  %5871 = vmatprep.mubr.msk.f32.mxu0 %vm6583_vm1, %v6584_v37  ;;  %v1316_v23 = vld [vmem:[%s7759_s4 + $0x1] sm:$0x1] }
  0x46   :  { %5878 = vmatprep.mubr.msk.f32.mxu1 %vm6583_vm1, %v6584_v37 }
  0x4a   :  { %6253 = vmatpush3.bf16.xpose.msk.msra.mxu0 %vm6926_vm2, %v6251_v38 }
  0x4b   :  { %6257 = vmatpush3.bf16.xpose.msk.msra.mxu1 %vm6926_vm2, %v6251_v38  ;;  %6258 = vmatprep.subr.bf16.mxu0 %v6582_v36 }
  0x4c   :  { %6262 = vmatprep.subr.bf16.mxu1 %v6582_v36 }
  0x51   :  { %5872 = vmatmul.mubr.msk.f32.vlgmr.msra.gmra.mrb[16].mxu0 %vm76_vm0, %v1315_v11 }
  0x52   :  { %5879 = vmatmul.mubr.msk.f32.vlgmr.msra.gmra.mrb[16].mxu1 %vm76_vm0, %v1316_v23  ;;  %6261 = vmatpush3.bf16.xpose.msk.msra.mxu0 %vm6926_vm2, %v6251_v38 }
  0x53   :  { %6265 = vmatpush3.bf16.xpose.msk.msra.mxu1 %vm6926_vm2, %v6251_v38  ;;  %5885 = vmatprep.mubr.msk.f32.mxu0 %vm6583_vm1, %v6584_v37 }
  0x54   :  { %6266 = vmatprep.subr.bf16.mxu0 %v6582_v36  ;;  %5892 = vmatprep.mubr.msk.f32.mxu1 %vm6583_vm1, %v6584_v37 }
  0x55   :  { %6270 = vmatprep.subr.bf16.mxu1 %v6582_v36 }
  0x59   :  { %5886 = vmatmul.mubr.msk.f32.vlgmr.msra.gmra.mrb[18].mxu0 %vm76_vm0, %v1317_v40 }
  0x5a   :  { %6269 = vmatpush3.bf16.xpose.msk.msra.mxu0 %vm6926_vm2, %v6251_v38  ;;  %5893 = vmatmul.mubr.msk.f32.vlgmr.msra.gmra.mrb[18].mxu1 %vm76_vm0, %v1318_v41 }
  0x5b   :  { %6273 = vmatpush3.bf16.xpose.msk.msra.mxu1 %vm6926_vm2, %v6251_v38  ;;  %5899 = vmatprep.mubr.msk.f32.mxu0 %vm6583_vm1, %v6584_v37 }
  0x5c   :  { %6274 = vmatprep.subr.bf16.mxu0 %v6582_v36  ;;  %5906 = vmatprep.mubr.msk.f32.mxu1 %vm6583_vm1, %v6584_v37 }
  0x5d   :  { %6278 = vmatprep.subr.bf16.mxu1 %v6582_v36 }
  0x61   :  { %5900 = vmatmul.mubr.msk.f32.vlgmr.msra.gmra.mrb[20].mxu0 %vm76_vm0, %v1319_v42  ;;  %v37_v42 = vlaneseq }
  0x62   :  { %6277 = vmatpush3.bf16.xpose.msk.msra.mxu0 %vm6926_vm2, %v6251_v38  ;;  %5907 = vmatmul.mubr.msk.f32.vlgmr.msra.gmra.mrb[20].mxu1 %vm76_vm0, %v1320_v43 }
  0x63   :  { %6281 = vmatpush3.bf16.xpose.msk.msra.mxu1 %vm6926_vm2, %v6251_v38  ;;  %5913 = vmatprep.mubr.msk.f32.mxu0 %vm6583_vm1, %v6584_v37  ;;  %v38_v43 = vshrl.u32 %v37_v42, 7 }
  0x64   :  { %5920 = vmatprep.mubr.msk.f32.mxu1 %vm6583_vm1, %v6584_v37 }
  0x69   :  { %5914 = vmatmul.mubr.msk.f32.vlgmr.msra.gmra.mrb[22].mxu0 %vm76_vm0, %v1321_v44  ;;  %v7033_v44 = vsub.s32 0, %v38_v43 }
  0x6a   :  { %5921 = vmatmul.mubr.msk.f32.vlgmr.msra.gmra.mrb[22].mxu1 %vm76_vm0, %v1322_v45 }
  0xdf   :  { %v5701_v47 = vpop.f32.mrb[0].mxu0 }
  0xe0   :  { %v5712_v48 = vpop.f32.mrb[0].mxu1  ;;  %v149_v49 = vpop.f32.mrb[1].mxu0 }
  0xe1   :  { %v6282_v51 = vpack.c.bf16 %v5701_v47, %v149_v49  ;;  %v224_v52 = vpop.f32.mrb[1].mxu1  ;;  %v39_v47 = vadd.s32 8, %v38_v43 }
  0xe2   :  { %v6288_v53 = vpack.c.bf16 %v5712_v48, %v224_v52  ;;  %v41_v48 = vand.u32 127, %v37_v42 }
  0xe3   :  { %6284 = vmatprep.subr.msk.bf16.mxu0 %vm6997_vm5, %v6282_v51 }
  0xe4   :  { %6290 = vmatprep.subr.msk.bf16.mxu1 %vm6997_vm5, %v6288_v53  ;;  %6287 = vmatpush3.bf16.msk.msra.mxu0 %vm6997_vm5, %v6282_v51  ;;  %vm7037_vm6 = vcmp.ne.s32.totalorder %v39_v47, %v41_v48  ;;  %vm7041_vm10 = vcmp.ne.s32.totalorder %v38_v43, %v41_v48 }
  0xe5   :  { %6293 = vmatpush3.bf16.msk.msra.mxu1 %vm6997_vm5, %v6288_v53 }
  0xe7   :  { %v5723_v54 = vpop.f32.mrb[2].mxu0 }
  0xe8   :  { %v5734_v55 = vpop.f32.mrb[2].mxu1  ;;  %v299_v56 = vpop.f32.mrb[3].mxu0 }
  0xe9   :  { %v7009_v57 = vpack.c.bf16 %v5723_v54, %v299_v56  ;;  %v374_v58 = vpop.f32.mrb[3].mxu1 }
  0xea   :  { %v7011_v59 = vpack.c.bf16 %v5734_v55, %v374_v58 }
  0xeb   :  { %6296 = vmatprep.subr.msk.bf16.mxu0 %vm6997_vm5, %v7009_v57 }
  0xec   :  { %6302 = vmatprep.subr.msk.bf16.mxu1 %vm6997_vm5, %v7011_v59 }
  0xef   :  { %v5745_v60 = vpop.f32.mrb[4].mxu0 }
  0xf0   :  { %v5756_v61 = vpop.f32.mrb[4].mxu1  ;;  %v449_v62 = vpop.f32.mrb[5].mxu0 }
  0xf1   :  { %v7019_v63 = vpack.c.bf16 %v5745_v60, %v449_v62  ;;  %v524_v0 = vpop.f32.mrb[5].mxu1 }
  0xf2   :  { %v7021_v1 = vpack.c.bf16 %v5756_v61, %v524_v0 }
  0xf7   :  { %v5767_v2 = vpop.f32.mrb[6].mxu0 }
  0xf8   :  { %v5778_v3 = vpop.f32.mrb[6].mxu1  ;;  %v599_v4 = vpop.f32.mrb[7].mxu0 }
  0xf9   :  { %v7023_v5 = vpack.c.bf16 %v5767_v2, %v599_v4  ;;  %v674_v6 = vpop.f32.mrb[7].mxu1 }
  0xfa   :  { %v7025_v7 = vpack.c.bf16 %v5778_v3, %v674_v6 }
  0xff   :  { %v5789_v8 = vpop.f32.mrb[8].mxu0 }
 0x100   :  { %v5800_v9 = vpop.f32.mrb[8].mxu1  ;;  %1914 = vperm.xlu0 %6376, %v5789_v8   ;;  %v781_v10 = vpop.f32.mrb[9].mxu0 }
 0x101   :  { %1924 = vperm.xlu1 %6377, %v5800_v9   ;;  %v856_v12 = vpop.f32.mrb[9].mxu1 }
 0x104   :  { %1909 = vperm.xlu0 %6376, %v781_v10  }
 0x105   :  { %1919 = vperm.xlu1 %6377, %v856_v12  }
 0x107   :  { %v5811_v13 = vpop.f32.mrb[10].mxu0 }
 0x108   :  { %v931_v14 = vpop.f32.mrb[11].mxu0  ;;  %v5822_v15 = vpop.f32.mrb[10].mxu1 }
 0x109   :  { %1934 = vperm.xlu1 %6377, %v5811_v13   ;;  %1929 = vperm.xlu0 %6376, %v931_v14   ;;  %v1006_v16 = vpop.f32.mrb[11].mxu1 }
 0x10d   :  { %1944 = vperm.xlu1 %6377, %v5822_v15   ;;  %1939 = vperm.xlu0 %6376, %v1006_v16  }
 0x10f   :  { %v5833_v17 = vpop.f32.mrb[12].mxu0 }
 0x110   :  { %v1081_v18 = vpop.f32.mrb[13].mxu0  ;;  %v5844_v19 = vpop.f32.mrb[12].mxu1 }
 0x111   :  { %1954 = vperm.xlu1 %6377, %v5833_v17   ;;  %1949 = vperm.xlu0 %6376, %v1081_v18   ;;  %v1156_v20 = vpop.f32.mrb[13].mxu1 }
 0x115   :  { %1964 = vperm.xlu1 %6377, %v5844_v19   ;;  %1959 = vperm.xlu0 %6376, %v1156_v20  }
 0x117   :  { %v5855_v21 = vpop.f32.mrb[14].mxu0 }
 0x118   :  { %v1231_v22 = vpop.f32.mrb[15].mxu0  ;;  %v5866_v24 = vpop.f32.mrb[14].mxu1 }
 0x119   :  { %1974 = vperm.xlu1 %6377, %v5855_v21   ;;  %1969 = vperm.xlu0 %6376, %v1231_v22   ;;  %v1306_v25 = vpop.f32.mrb[15].mxu1 }
 0x11d   :  { %1984 = vperm.xlu1 %6377, %v5866_v24   ;;  %1979 = vperm.xlu0 %6376, %v1306_v25  }
 0x124   :  { %v1392_v26 = vpop.f32.mrb[16].mxu0 }
 0x125   :  { %v1465_v27 = vpop.f32.mrb[16].mxu1  ;;  %v5873_v28 = vpop.f32.mrb[17].mxu0  ;;  %v1990_v45 = vrot.slane %v1392_v26, %v7033_v44 }
 0x126   :  { %v5880_v29 = vpop.f32.mrb[17].mxu1  ;;  %v1994_v46 = vrot.slane %v1465_v27, %v7033_v44 }
 0x12c   :  { %v1538_v30 = vpop.f32.mrb[18].mxu0 }
 0x12d   :  { %v5887_v31 = vpop.f32.mrb[19].mxu0  ;;  %v1611_v32 = vpop.f32.mrb[18].mxu1  ;;  %v1998_v3 = vrot.slane %v1538_v30, %v7033_v44 }
 0x12e   :  { %v5894_v33 = vpop.f32.mrb[19].mxu1  ;;  %v2002_v16 = vrot.slane %v1611_v32, %v7033_v44 }
 0x134   :  { %v1684_v34 = vpop.f32.mrb[20].mxu0 }
 0x135   :  { %v5901_v35 = vpop.f32.mrb[21].mxu0  ;;  %v7027_v38 = vpop.f32.mrb[20].mxu1  ;;  %v2006_v28 = vrot.slane %v1684_v34, %v7033_v44 }
 0x136   :  { %v5908_v39 = vpop.f32.mrb[21].mxu1 }
 0x13c   :  { %v7029_v11 = vpop.f32.mrb[22].mxu0 }
 0x13d   :  { %v5915_v23 = vpop.f32.mrb[23].mxu0  ;;  %v7031_v40 = vpop.f32.mrb[22].mxu1 }
 0x13e   :  { %v5922_v41 = vpop.f32.mrb[23].mxu1 }
 0x17f   :  { %v1915_v49 = vpop.permute.xlu0 %1914 }
 0x180   :  { %v1925_v51 = vpop.permute.xlu1 %1924  ;;  %v2020_v52 = vadd.f32 %v1990_v45, %v1915_v49 }
 0x181   :  { %v2022_v53 = vadd.f32 %v1994_v46, %v1925_v51 }
 0x182   :  { %v2052_v54 = vmul.f32 0.2, %v2020_v52  ;;  %vm2036_vm7 = vcmp.gt.f32.partialorder %v2020_v52, 0.0 }
 0x183   :  { %v2054_v56 = vmul.f32 0.2, %v2022_v53  ;;  %v1910_v58 = vpop.permute.xlu0 %1909  ;;  %vm2038_vm8 = vcmp.gt.f32.partialorder %v2022_v53, 0.0 }
 0x184   :  { %v1920_v60 = vpop.permute.xlu1 %1919  ;;  %v2019_v61 = vadd.f32 %v1990_v45, %v1910_v58  ;;  %v2068_v62 = vsel %vm2036_vm7, %v2020_v52, %v2052_v54  ;;  %v2010_v45 = vrot.slane %v7027_v38, %v7033_v44 }
 0x185   :  { %v2021_v2 = vadd.f32 %v1994_v46, %v1920_v60  ;;  %v2070_v4 = vsel %vm2038_vm8, %v2022_v53, %v2054_v56  ;;  %v7048_v6 = vsel %vm7037_vm6, %v2068_v62, -9e+15 }
 0x186   :  { %v2051_v8 = vmul.f32 0.2, %v2019_v61  ;;  %v7052_v9 = vsel %vm7037_vm6, %v2070_v4, -9e+15  ;;  %v2108_v10 = vsel %vm2107_vm9, %v7048_v6, -inf  ;;  %vm2035_vm11 = vcmp.gt.f32.partialorder %v2019_v61, 0.0 }
 0x187   :  { %v2053_v12 = vmul.f32 0.2, %v2021_v2  ;;  %v2114_v13 = vsel %vm2107_vm9, %v7052_v9, -inf  ;;  %2109 = vmax.xlane.f32.xlu1 %v2108_v10  ;;  %vm2037_vm13 = vcmp.gt.f32.partialorder %v2021_v2, 0.0 }
 0x188   :  { %v1935_v14 = vpop.permute.xlu1 %1934  ;;  %2115 = vmax.xlane.f32.xlu0 %v2114_v13  ;;  %v1930_v15 = vpop.permute.xlu0 %1929  ;;  %v2067_v17 = vsel %vm2035_vm11, %v2019_v61, %v2051_v8  ;;  %v2014_v61 = vrot.slane %v7029_v11, %v7033_v44 }
 0x189   :  { %v2024_v18 = vadd.f32 %v1998_v3, %v1935_v14  ;;  %v2023_v19 = vadd.f32 %v1998_v3, %v1930_v15  ;;  %v7061_v20 = vsel %vm7041_vm10, %v2067_v17, -9e+15  ;;  %v2069_v21 = vsel %vm2037_vm13, %v2021_v2, %v2053_v12 }
 0x18a   :  { %v2104_v22 = vsel %vm2103_vm12, %v7061_v20, -inf  ;;  %v7068_v29 = vsel %vm7041_vm10, %v2069_v21, -9e+15  ;;  %v2018_v17 = vrot.slane %v7031_v40, %v7033_v44 }
 0x18b   :  { %v2056_v24 = vmul.f32 0.2, %v2024_v18  ;;  %v2055_v25 = vmul.f32 0.2, %v2023_v19  ;;  %vm2039_vm14 = vcmp.gt.f32.partialorder %v2023_v19, 0.0  ;;  %vm2040_vm15 = vcmp.gt.f32.partialorder %v2024_v18, 0.0 }
 0x18c   :  { %v1945_v26 = vpop.permute.xlu1 %1944  ;;  %2105 = vmax.xlane.f32.xlu0 %v2104_v22  ;;  %v1940_v27 = vpop.permute.xlu0 %1939  ;;  %v2111_v41 = vsel %vm2103_vm12, %v7068_v29, -inf }
 0x18d   :  { %v2026_v30 = vadd.f32 %v2002_v16, %v1945_v26  ;;  %v2025_v31 = vadd.f32 %v2002_v16, %v1940_v27  ;;  %v2071_v32 = vsel %vm2039_vm14, %v2023_v19, %v2055_v25  ;;  %v2072_v33 = vsel %vm2040_vm15, %v2024_v18, %v2056_v24 }
 0x18e   :  { %v7072_v35 = vsel %vm7041_vm10, %v2071_v32, -9e+15  ;;  %v7082_v46 = vsel %vm7037_vm6, %v2072_v33, -9e+15 }
 0x18f   :  { %v2058_v39 = vmul.f32 0.2, %v2026_v30  ;;  %v2057_v23 = vmul.f32 0.2, %v2025_v31  ;;  %v2117_v34 = vsel %vm2103_vm12, %v7072_v35, -inf  ;;  %vm2041_vm2 = vcmp.gt.f32.partialorder %v2025_v31, 0.0 }
 0x190   :  { %v1955_v42 = vpop.permute.xlu1 %1954  ;;  %2112 = vmax.xlane.f32.xlu0 %v2111_v41  ;;  %v1950_v43 = vpop.permute.xlu0 %1949  ;;  %2118 = vmax.xlane.f32.xlu1 %v2117_v34  ;;  %vm2042_vm4 = vcmp.gt.f32.partialorder %v2026_v30, 0.0  ;;  %v2120_v56 = vsel %vm2107_vm9, %v7082_v46, -inf }
 0x191   :  { %v2028_v47 = vadd.f32 %v2006_v28, %v1955_v42  ;;  %v2027_v48 = vadd.f32 %v2006_v28, %v1950_v43  ;;  %v2073_v49 = vsel %vm2041_vm2, %v2025_v31, %v2057_v23  ;;  %v2074_v51 = vsel %vm2042_vm4, %v2026_v30, %v2058_v39 }
 0x192   :  { %v7086_v52 = vsel %vm7041_vm10, %v2073_v49, -9e+15  ;;  %v7096_v62 = vsel %vm7037_vm6, %v2074_v51, -9e+15 }
 0x193   :  { %v2060_v53 = vmul.f32 0.2, %v2028_v47  ;;  %v2059_v54 = vmul.f32 0.2, %v2027_v48  ;;  %v2123_v38 = vsel %vm2103_vm12, %v7086_v52, -inf  ;;  %vm2043_vm7 = vcmp.gt.f32.partialorder %v2027_v48, 0.0 }
 0x194   :  { %v1965_v58 = vpop.permute.xlu1 %1964  ;;  %2121 = vmax.xlane.f32.xlu0 %v2120_v56  ;;  %v1960_v60 = vpop.permute.xlu0 %1959  ;;  %2124 = vmax.xlane.f32.xlu1 %v2123_v38  ;;  %vm2044_vm8 = vcmp.gt.f32.partialorder %v2028_v47, 0.0  ;;  %v2126_v14 = vsel %vm2107_vm9, %v7096_v62, -inf }
 0x195   :  { %v2030_v2 = vadd.f32 %v2010_v45, %v1965_v58  ;;  %v2029_v3 = vadd.f32 %v2010_v45, %v1960_v60  ;;  %v2075_v4 = vsel %vm2043_vm7, %v2027_v48, %v2059_v54  ;;  %v2076_v8 = vsel %vm2044_vm8, %v2028_v47, %v2060_v53 }
 0x196   :  { %v7100_v10 = vsel %vm7041_vm10, %v2075_v4, -9e+15  ;;  %v7110_v18 = vsel %vm7037_vm6, %v2076_v8, -9e+15  ;;  %vm3058_vm8 = vcmask 64512  }
 0x197   :  { %v2062_v12 = vmul.f32 0.2, %v2030_v2  ;;  %v2061_v13 = vmul.f32 0.2, %v2029_v3  ;;  %v2129_v11 = vsel %vm2103_vm12, %v7100_v10, -inf  ;;  %vm2045_vm11 = vcmp.gt.f32.partialorder %v2029_v3, 0.0 }
 0x198   :  { %v1975_v15 = vpop.permute.xlu1 %1974  ;;  %2127 = vmax.xlane.f32.xlu0 %v2126_v14  ;;  %v1970_v16 = vpop.permute.xlu0 %1969  ;;  %2130 = vmax.xlane.f32.xlu1 %v2129_v11  ;;  %vm2046_vm13 = vcmp.gt.f32.partialorder %v2030_v2, 0.0  ;;  %v2132_v28 = vsel %vm2107_vm9, %v7110_v18, -inf }
 0x199   :  { %v2032_v19 = vadd.f32 %v2014_v61, %v1975_v15  ;;  %v2031_v21 = vadd.f32 %v2014_v61, %v1970_v16  ;;  %v2077_v22 = vsel %vm2045_vm11, %v2029_v3, %v2061_v13  ;;  %v2078_v24 = vsel %vm2046_vm13, %v2030_v2, %v2062_v12 }
 0x19a   :  { %v7114_v25 = vsel %vm7041_vm10, %v2077_v22, -9e+15  ;;  %v7122_v32 = vsel %vm7037_vm6, %v2078_v24, -9e+15 }
 0x19b   :  { %v2064_v26 = vmul.f32 0.2, %v2032_v19  ;;  %v2063_v27 = vmul.f32 0.2, %v2031_v21  ;;  %v2135_v40 = vsel %vm2103_vm12, %v7114_v25, -inf  ;;  %vm2047_vm14 = vcmp.gt.f32.partialorder %v2031_v21, 0.0 }
 0x19c   :  { %v1985_v30 = vpop.permute.xlu1 %1984  ;;  %2133 = vmax.xlane.f32.xlu0 %v2132_v28  ;;  %v1980_v31 = vpop.permute.xlu0 %1979  ;;  %2136 = vmax.xlane.f32.xlu1 %v2135_v40  ;;  %vm2048_vm15 = vcmp.gt.f32.partialorder %v2032_v19, 0.0  ;;  %v2138_v45 = vsel %vm2107_vm9, %v7122_v32, -inf }
 0x19d   :  { %v2034_v33 = vadd.f32 %v2018_v17, %v1985_v30  ;;  %v2033_v39 = vadd.f32 %v2018_v17, %v1980_v31  ;;  %v2079_v23 = vsel %vm2047_vm14, %v2031_v21, %v2063_v27  ;;  %v2080_v41 = vsel %vm2048_vm15, %v2032_v19, %v2064_v26 }
 0x19e   :  { %v7126_v34 = vsel %vm7041_vm10, %v2079_v23, -9e+15  ;;  %v7134_v48 = vsel %vm7037_vm6, %v2080_v41, -9e+15 }
 0x19f   :  { %v2066_v42 = vmul.f32 0.2, %v2034_v33  ;;  %v2065_v43 = vmul.f32 0.2, %v2033_v39  ;;  %v2141_v47 = vsel %vm2103_vm12, %v7126_v34, -inf  ;;  %vm2049_vm2 = vcmp.gt.f32.partialorder %v2033_v39, 0.0 }
 0x1a0   :  { %2139 = vmax.xlane.f32.xlu0 %v2138_v45  ;;  %2142 = vmax.xlane.f32.xlu1 %v2141_v47  ;;  %vm2050_vm4 = vcmp.gt.f32.partialorder %v2034_v33, 0.0  ;;  %v2144_v54 = vsel %vm2107_vm9, %v7134_v48, -inf }
 0x1a1   :  { %v2081_v49 = vsel %vm2049_vm2, %v2033_v39, %v2065_v43  ;;  %v2082_v51 = vsel %vm2050_vm4, %v2034_v33, %v2066_v42 }
 0x1a2   :  { %v7138_v53 = vsel %vm7041_vm10, %v2081_v49, -9e+15  ;;  %v7146_v38 = vsel %vm7037_vm6, %v2082_v51, -9e+15 }
 0x1a3   :  { %v2147_v56 = vsel %vm2103_vm12, %v7138_v53, -inf  ;;  %v2150_v58 = vsel %vm2107_vm9, %v7146_v38, -inf }
 0x1a4   :  { %2145 = vmax.xlane.f32.xlu0 %v2144_v54  ;;  %2148 = vmax.xlane.f32.xlu1 %v2147_v56 }
 0x1a8   :  { %2151 = vmax.xlane.f32.xlu0 %v2150_v58 }
 0x214   :  { %v2110_v60 = vpop.xlane.xlu1 %2109 }
 0x215   :  { %v2116_v61 = vpop.xlane.xlu0 %2115  ;;  %v2154_v2 = vsub.f32 %v7048_v6, %v2110_v60 }
 0x216   :  { %v2156_v3 = vsub.f32 %v7052_v9, %v2116_v61 }
 0x217   :  { %v2171_v4 = vmul.f32 1.442695, %v2154_v2 }
 0x218   :  { %v2175_v8 = vmul.f32 1.442695, %v2156_v3 }
 0x219   :  { %6378 = vpow2.f32 %v2171_v4  ;;  %v2106_v12 = vpop.xlane.xlu0 %2105 }
 0x21a   :  { %v2153_v13 = vsub.f32 %v7061_v20, %v2106_v12  ;;  %6380 = vpow2.f32 %v2175_v8 }
 0x21c   :  { %v2169_v14 = vmul.f32 1.442695, %v2153_v13 }
 0x21d   :  { %v2113_v11 = vpop.xlane.xlu0 %2112  ;;  %v2119_v15 = vpop.xlane.xlu1 %2118 }
 0x21e   :  { %6382 = vpow2.f32 %v2169_v14  ;;  %v2155_v16 = vsub.f32 %v7068_v29, %v2113_v11  ;;  %v2157_v17 = vsub.f32 %v7072_v35, %v2119_v15 }
 0x220   :  { %v2173_v19 = vmul.f32 1.442695, %v2155_v16  ;;  %v2177_v21 = vmul.f32 1.442695, %v2157_v17 }
 0x221   :  { %v2122_v6 = vpop.xlane.xlu0 %2121  ;;  %v2125_v22 = vpop.xlane.xlu1 %2124 }
 0x222   :  { %6384 = vpow2.f32 %v2173_v19  ;;  %v2158_v9 = vsub.f32 %v7082_v46, %v2122_v6  ;;  %v2159_v24 = vsub.f32 %v7086_v52, %v2125_v22 }
 0x223   :  { %v7157_v26 = vpop.eup %6378  ;;  %6386 = vpow2.f32 %v2177_v21 }
 0x224   :  { %v2179_v20 = vmul.f32 1.442695, %v2158_v9  ;;  %v2181_v27 = vmul.f32 1.442695, %v2159_v24  ;;  %v2204_v28 = vsel %vm2107_vm9, %v7157_v26, 0.0  ;;  %v7161_v29 = vpop.eup %6380 }
 0x225   :  { %v2128_v35 = vpop.xlane.xlu0 %2127  ;;  %v2131_v40 = vpop.xlane.xlu1 %2130  ;;  %2205 = vadd.xlane.f32.xlu0 %v2204_v28  ;;  %v2210_v39 = vsel %vm2107_vm9, %v7161_v29, 0.0 }
 0x226   :  { %6388 = vpow2.f32 %v2179_v20  ;;  %v2160_v30 = vsub.f32 %v7096_v62, %v2128_v35  ;;  %v2161_v46 = vsub.f32 %v7100_v10, %v2131_v40 }
 0x227   :  { %6390 = vpow2.f32 %v2181_v27 }
 0x228   :  { %v7165_v31 = vpop.eup %6382  ;;  %v2183_v52 = vmul.f32 1.442695, %v2160_v30  ;;  %v2185_v33 = vmul.f32 1.442695, %v2161_v46 }
 0x229   :  { %v2134_v23 = vpop.xlane.xlu0 %2133  ;;  %v2137_v41 = vpop.xlane.xlu1 %2136  ;;  %2211 = vadd.xlane.f32.xlu0 %v2210_v39  ;;  %v2201_v42 = vsel %vm2103_vm12, %v7165_v31, 0.0 }
 0x22a   :  { %6392 = vpow2.f32 %v2183_v52  ;;  %v2162_v43 = vsub.f32 %v7110_v18, %v2134_v23  ;;  %v2163_v62 = vsub.f32 %v7114_v25, %v2137_v41  ;;  %2202 = vadd.xlane.f32.xlu1 %v2201_v42 }
 0x22b   :  { %6394 = vpow2.f32 %v2185_v33 }
 0x22c   :  { %v7173_v10 = vpop.eup %6384  ;;  %v2187_v45 = vmul.f32 1.442695, %v2162_v43  ;;  %v2189_v47 = vmul.f32 1.442695, %v2163_v62 }
 0x22d   :  { %v2140_v49 = vpop.xlane.xlu0 %2139  ;;  %v2207_v51 = vsel %vm2103_vm12, %v7173_v10, 0.0  ;;  %v2143_v54 = vpop.xlane.xlu1 %2142 }
 0x22e   :  { %v7177_v56 = vpop.eup %6386  ;;  %6396 = vpow2.f32 %v2187_v45  ;;  %v2164_v58 = vsub.f32 %v7122_v32, %v2140_v49  ;;  %2208 = vadd.xlane.f32.xlu1 %v2207_v51  ;;  %v2165_v18 = vsub.f32 %v7126_v34, %v2143_v54 }
 0x22f   :  { %6398 = vpow2.f32 %v2189_v47  ;;  %v2213_v4 = vsel %vm2103_vm12, %v7177_v56, 0.0 }
 0x230   :  { %v7181_v25 = vpop.eup %6388  ;;  %v2191_v60 = vmul.f32 1.442695, %v2164_v58  ;;  %v2193_v61 = vmul.f32 1.442695, %v2165_v18 }
 0x231   :  { %v2146_v2 = vpop.xlane.xlu0 %2145  ;;  %v2216_v3 = vsel %vm2107_vm9, %v7181_v25, 0.0  ;;  %v2149_v8 = vpop.xlane.xlu1 %2148 }
 0x232   :  { %v7187_v12 = vpop.eup %6390  ;;  %6400 = vpow2.f32 %v2191_v60  ;;  %v2166_v32 = vsub.f32 %v7134_v48, %v2146_v2  ;;  %2217 = vadd.xlane.f32.xlu0 %v2216_v3  ;;  %2214 = vadd.xlane.f32.xlu1 %v2213_v4  ;;  %v2167_v34 = vsub.f32 %v7138_v53, %v2149_v8 }
 0x233   :  { %6402 = vpow2.f32 %v2193_v61  ;;  %v2219_v17 = vsel %vm2103_vm12, %v7187_v12, 0.0 }
 0x234   :  { %v7191_v13 = vpop.eup %6392  ;;  %v2195_v14 = vmul.f32 1.442695, %v2166_v32  ;;  %v2197_v11 = vmul.f32 1.442695, %v2167_v34 }
 0x235   :  { %v2152_v15 = vpop.xlane.xlu0 %2151  ;;  %v2222_v16 = vsel %vm2107_vm9, %v7191_v13, 0.0  ;;  %v7197_v19 = vpop.eup %6394 }
 0x236   :  { %6404 = vpow2.f32 %v2195_v14  ;;  %v2168_v48 = vsub.f32 %v7146_v38, %v2152_v15  ;;  %2223 = vadd.xlane.f32.xlu0 %v2222_v16  ;;  %2220 = vadd.xlane.f32.xlu1 %v2219_v17  ;;  %v2225_v22 = vsel %vm2103_vm12, %v7197_v19, 0.0 }
 0x237   :  { %6406 = vpow2.f32 %v2197_v11 }
 0x238   :  { %v7200_v53 = vpop.eup %6396  ;;  %v2199_v21 = vmul.f32 1.442695, %v2168_v48 }
 0x239   :  { %v2228_v6 = vsel %vm2107_vm9, %v7200_v53, 0.0  ;;  %v7206_v9 = vpop.eup %6398 }
 0x23a   :  { %6408 = vpow2.f32 %v2199_v21  ;;  %2229 = vadd.xlane.f32.xlu0 %v2228_v6  ;;  %2226 = vadd.xlane.f32.xlu1 %v2225_v22  ;;  %v2231_v20 = vsel %vm2103_vm12, %v7206_v9, 0.0 }
 0x23c   :  { %v7208_v24 = vpop.eup %6400 }
 0x23d   :  { %v2234_v38 = vsel %vm2107_vm9, %v7208_v24, 0.0  ;;  %v7214_v27 = vpop.eup %6402 }
 0x23e   :  { %2235 = vadd.xlane.f32.xlu0 %v2234_v38  ;;  %2232 = vadd.xlane.f32.xlu1 %v2231_v20  ;;  %v2237_v40 = vsel %vm2103_vm12, %v7214_v27, 0.0  ;;  %v3051_v20 = vld [vmem:[%s7760_s5 + $0x8] sm:$0xff] }
 0x240   :  { %v7216_v28 = vpop.eup %6404 }
 0x241   :  { %v2240_v35 = vsel %vm2107_vm9, %v7216_v28, 0.0  ;;  %v7222_v30 = vpop.eup %6406 }
 0x242   :  { %2241 = vadd.xlane.f32.xlu0 %v2240_v35  ;;  %2238 = vadd.xlane.f32.xlu1 %v2237_v40  ;;  %v2243_v33 = vsel %vm2103_vm12, %v7222_v30, 0.0 }
 0x244   :  { %v7224_v46 = vpop.eup %6408 }
 0x245   :  { %v2246_v52 = vsel %vm2107_vm9, %v7224_v46, 0.0 }
 0x246   :  { %2247 = vadd.xlane.f32.xlu0 %v2246_v52  ;;  %2244 = vadd.xlane.f32.xlu1 %v2243_v33 }
 0x2b2   :  { %v2206_v39 = vpop.xlane.xlu0 %2205 }
 0x2b3   :  { %6410 = vrcp.f32 %v2206_v39 }
 0x2b6   :  { %v2212_v41 = vpop.xlane.xlu0 %2211 }
 0x2b7   :  { %v2203_v23 = vpop.xlane.xlu1 %2202 }
 0x2b8   :  { %6412 = vrcp.f32 %v2203_v23 }
 0x2b9   :  { %6414 = vrcp.f32 %v2212_v41 }
 0x2bb   :  { %v2209_v42 = vpop.xlane.xlu1 %2208 }
 0x2bc   :  { %6416 = vrcp.f32 %v2209_v42 }
 0x2bd   :  { %v6411_v45 = vpop.eup %6410 }
 0x2be   :  { %v2266_v58 = vmul.f32 %v6411_v45, %v7157_v26 }
 0x2bf   :  { %v2218_v43 = vpop.xlane.xlu0 %2217  ;;  %v2215_v62 = vpop.xlane.xlu1 %2214 }
 0x2c0   :  { %6418 = vrcp.f32 %v2218_v43 }
 0x2c1   :  { %6420 = vrcp.f32 %v2215_v62 }
 0x2c2   :  { %v6413_v47 = vpop.eup %6412 }
 0x2c3   :  { %v2224_v49 = vpop.xlane.xlu0 %2223  ;;  %v2221_v51 = vpop.xlane.xlu1 %2220  ;;  %v2265_v54 = vmul.f32 %v6413_v47, %v7165_v31 }
 0x2c4   :  { %6422 = vrcp.f32 %v2224_v49  ;;  %v6415_v18 = vpop.eup %6414 }
 0x2c5   :  { %6424 = vrcp.f32 %v2221_v51  ;;  %5927 = vmatprep.mubr.msk.f32.mxu0 %vm2103_vm12, %v2265_v54  ;;  %v2268_v31 = vmul.f32 %v6415_v18, %v7161_v29 }
 0x2c6   :  { %v6417_v60 = vpop.eup %6416  ;;  %5928 = vmatmul.mubr.msk.f32.vlgmr.msra.gmra.mrb[24].mxu0 %vm2103_vm12, %v2266_v58 }
 0x2c7   :  { %6299 = vmatpush3.bf16.msk.msra.mxu0 %vm6997_vm5, %v7009_v57  ;;  %v2230_v61 = vpop.xlane.xlu0 %2229  ;;  %v2227_v2 = vpop.xlane.xlu1 %2226  ;;  %v2267_v3 = vmul.f32 %v6417_v60, %v7173_v10 }
 0x2c8   :  { %6426 = vrcp.f32 %v2230_v61  ;;  %6308 = vmatprep.subr.msk.bf16.mxu0 %vm6997_vm5, %v7019_v63 }
 0x2c9   :  { %6428 = vrcp.f32 %v2227_v2  ;;  %5934 = vmatprep.mubr.msk.f32.mxu1 %vm2103_vm12, %v2267_v3 }
 0x2ca   :  { %v6419_v26 = vpop.eup %6418  ;;  %5935 = vmatmul.mubr.msk.f32.vlgmr.msra.gmra.mrb[24].mxu1 %vm2103_vm12, %v2268_v31 }
 0x2cb   :  { %v6421_v4 = vpop.eup %6420  ;;  %v2270_v57 = vmul.f32 %v6419_v26, %v7181_v25  ;;  %6305 = vmatpush3.bf16.msk.msra.mxu1 %vm6997_vm5, %v7011_v59  ;;  %v2236_v10 = vpop.xlane.xlu0 %2235 }
 0x2cc   :  { %v2233_v29 = vpop.xlane.xlu1 %2232  ;;  %6430 = vrcp.f32 %v2236_v10  ;;  %6314 = vmatprep.subr.msk.bf16.mxu1 %vm6997_vm5, %v7021_v1  ;;  %v2269_v8 = vmul.f32 %v6421_v4, %v7177_v56 }
 0x2cd   :  { %6432 = vrcp.f32 %v2233_v29 }
 0x2ce   :  { %v6423_v32 = vpop.eup %6422  ;;  %5941 = vmatprep.mubr.msk.f32.mxu0 %vm2103_vm12, %v2269_v8 }
 0x2cf   :  { %v6425_v34 = vpop.eup %6424  ;;  %v2272_v25 = vmul.f32 %v6423_v32, %v7191_v13  ;;  %5942 = vmatmul.mubr.msk.f32.vlgmr.msra.gmra.mrb[26].mxu0 %vm2103_vm12, %v2270_v57  ;;  %v2242_v14 = vpop.xlane.xlu0 %2241 }
 0x2d0   :  { %v2239_v59 = vpop.xlane.xlu1 %2238  ;;  %6311 = vmatpush3.bf16.msk.msra.mxu0 %vm6997_vm5, %v7019_v63  ;;  %6434 = vrcp.f32 %v2242_v14  ;;  %v2271_v11 = vmul.f32 %v6425_v34, %v7187_v12 }
 0x2d1   :  { %6320 = vmatprep.subr.msk.bf16.mxu0 %vm6997_vm5, %v7023_v5  ;;  %6436 = vrcp.f32 %v2239_v59 }
 0x2d2   :  { %v6427_v56 = vpop.eup %6426  ;;  %5948 = vmatprep.mubr.msk.f32.mxu1 %vm2103_vm12, %v2271_v11 }
 0x2d3   :  { %v6429_v13 = vpop.eup %6428  ;;  %v2274_v15 = vmul.f32 %v6427_v56, %v7200_v53  ;;  %5949 = vmatmul.mubr.msk.f32.vlgmr.msra.gmra.mrb[26].mxu1 %vm2103_vm12, %v2272_v25  ;;  %v2248_v16 = vpop.xlane.xlu0 %2247 }
 0x2d4   :  { %v2245_v17 = vpop.xlane.xlu1 %2244  ;;  %6317 = vmatpush3.bf16.msk.msra.mxu1 %vm6997_vm5, %v7021_v1  ;;  %6438 = vrcp.f32 %v2248_v16  ;;  %v2273_v63 = vmul.f32 %v6429_v13, %v7197_v19  ;;  %v3054_v16 = vld [vmem:[%s7760_s5 + $0x20] sm:$0xff] }
 0x2d5   :  { %6326 = vmatprep.subr.msk.bf16.mxu1 %vm6997_vm5, %v7025_v7  ;;  %6440 = vrcp.f32 %v2245_v17 }
 0x2d6   :  { %v6431_v12 = vpop.eup %6430  ;;  %5955 = vmatprep.mubr.msk.f32.mxu0 %vm2103_vm12, %v2273_v63 }
 0x2d7   :  { %v6433_v48 = vpop.eup %6432  ;;  %v2276_v53 = vmul.f32 %v6431_v12, %v7208_v24  ;;  %5956 = vmatmul.mubr.msk.f32.vlgmr.msra.gmra.mrb[28].mxu0 %vm2103_vm12, %v2274_v15 }
 0x2d8   :  { %6323 = vmatpush3.bf16.msk.msra.mxu0 %vm6997_vm5, %v7023_v5  ;;  %v2275_v1 = vmul.f32 %v6433_v48, %v7206_v9 }
 0x2da   :  { %v6435_v19 = vpop.eup %6434  ;;  %5962 = vmatprep.mubr.msk.f32.mxu1 %vm2103_vm12, %v2275_v1 }
 0x2db   :  { %v6437_v21 = vpop.eup %6436  ;;  %v2278_v6 = vmul.f32 %v6435_v19, %v7216_v28  ;;  %5963 = vmatmul.mubr.msk.f32.vlgmr.msra.gmra.mrb[28].mxu1 %vm2103_vm12, %v2276_v53  ;;  %v7307_v28 = vld [vmem:[%s7760_s5 + $0x18] sm:$0xff] }
 0x2dc   :  { %6329 = vmatpush3.bf16.msk.msra.mxu1 %vm6997_vm5, %v7025_v7  ;;  %v2277_v22 = vmul.f32 %v6437_v21, %v7214_v27  ;;  %v3050_v7 = vld [vmem:[%s7760_s5] sm:$0xff]  ;;  %v7301_v27 = vld [vmem:[%s7760_s5 + $0x10] sm:$0xff] }
 0x2dd   :  { %5979 = vmatprep.subr.mxu0 %v3050_v7  ;;  %5984 = vmatprep.subr.mxu1 %v3051_v20 }
 0x2de   :  { %v6439_v24 = vpop.eup %6438  ;;  %5969 = vmatprep.mubr.msk.f32.mxu0 %vm2103_vm12, %v2277_v22 }
 0x2df   :  { %v6441_v5 = vpop.eup %6440  ;;  %v2280_v9 = vmul.f32 %v6439_v24, %v7224_v46  ;;  %5970 = vmatmul.mubr.msk.f32.vlgmr.msra.gmra.mrb[30].mxu0 %vm2103_vm12, %v2278_v6 }
 0x2e0   :  { %v2279_v38 = vmul.f32 %v6441_v5, %v7222_v30  ;;  %5980 = vmatpush3.msra.mxu0 %v3050_v7  ;;  %v3055_v5 = vld [vmem:[%s7760_s5 + $0x28] sm:$0xff] }
 0x2e1   :  { %5989 = vmatprep.subr.mxu0 %v7301_v27 }
 0x2e2   :  { %5976 = vmatprep.mubr.msk.f32.mxu1 %vm2103_vm12, %v2279_v38 }
 0x2e3   :  { %5977 = vmatmul.mubr.msk.f32.vlgmr.msra.gmra.mrb[30].mxu1 %vm2103_vm12, %v2280_v9 }
 0x2e4   :  { %5985 = vmatpush3.msra.mxu1 %v3051_v20 }
 0x2e5   :  { %5994 = vmatprep.subr.mxu1 %v7307_v28 }
 0x399   :  { %v5929_v35 = vpop.f32.mrb[24].mxu0 }
 0x39a   :  { %v2971_v40 = vmin.f32 %v5929_v35, 0.0  ;;  %v2357_v30 = vpop.f32.mrb[25].mxu0  ;;  %vm2955_vm7 = vcmp.gt.f32.partialorder %v5929_v35, 0.0 }
 0x39b   :  { %v2970_v46 = vmin.f32 %v2357_v30, 0.0  ;;  %vm2954_vm11 = vcmp.gt.f32.partialorder %v2357_v30, 0.0 }
 0x39c   :  { %v2988_v52 = vmul.f32 1.442695, %v2971_v40 }
 0x39d   :  { %v2986_v33 = vmul.f32 1.442695, %v2970_v46  ;;  %v5936_v39 = vpop.f32.mrb[24].mxu1 }
 0x39e   :  { %6442 = vpow2.f32 %v2988_v52  ;;  %v2973_v23 = vmin.f32 %v5936_v39, 0.0  ;;  %v2441_v41 = vpop.f32.mrb[25].mxu1  ;;  %vm2957_vm13 = vcmp.gt.f32.partialorder %v5936_v39, 0.0 }
 0x39f   :  { %6444 = vpow2.f32 %v2986_v33  ;;  %v2972_v42 = vmin.f32 %v2441_v41, 0.0  ;;  %vm2956_vm14 = vcmp.gt.f32.partialorder %v2441_v41, 0.0 }
 0x3a0   :  { %v2992_v43 = vmul.f32 1.442695, %v2973_v23 }
 0x3a1   :  { %v2990_v62 = vmul.f32 1.442695, %v2972_v42 }
 0x3a2   :  { %6446 = vpow2.f32 %v2992_v43  ;;  %v7310_v45 = vpop.f32.mrb[26].mxu0 }
 0x3a3   :  { %6448 = vpow2.f32 %v2990_v62  ;;  %v2975_v47 = vmin.f32 %v7310_v45, 0.0  ;;  %v7313_v49 = vpop.f32.mrb[27].mxu0  ;;  %vm2959_vm15 = vcmp.gt.f32.partialorder %v7310_v45, 0.0  ;;  %v3056_v62 = vld [vmem:[%s7760_s5 + $0x30] sm:$0xff] }
 0x3a4   :  { %v2974_v51 = vmin.f32 %v7313_v49, 0.0  ;;  %vm2958_vm2 = vcmp.gt.f32.partialorder %v7313_v49, 0.0 }
 0x3a5   :  { %v2996_v54 = vmul.f32 1.442695, %v2975_v47 }
 0x3a6   :  { %v2994_v58 = vmul.f32 1.442695, %v2974_v51  ;;  %v7316_v18 = vpop.f32.mrb[26].mxu1 }
 0x3a7   :  { %6450 = vpow2.f32 %v2996_v54  ;;  %v2977_v60 = vmin.f32 %v7316_v18, 0.0  ;;  %v7319_v61 = vpop.f32.mrb[27].mxu1  ;;  %vm2961_vm4 = vcmp.gt.f32.partialorder %v7316_v18, 0.0 }
 0x3a8   :  { %v6443_v2 = vpop.eup %6442  ;;  %6452 = vpow2.f32 %v2994_v58  ;;  %v2976_v3 = vmin.f32 %v7319_v61, 0.0 }
 0x3a9   :  { %v6445_v31 = vpop.eup %6444  ;;  %v5387_v26 = vadd.f32 -1.0, %v6443_v2  ;;  %v3000_v4 = vmul.f32 1.442695, %v2977_v60 }
 0x3aa   :  { %v5386_v57 = vadd.f32 -1.0, %v6445_v31  ;;  %v2998_v10 = vmul.f32 1.442695, %v2976_v3  ;;  %v7322_v29 = vpop.f32.mrb[28].mxu0 }
 0x3ab   :  { %v7324_v8 = vsel %vm2955_vm7, %v5929_v35, %v5387_v26  ;;  %6454 = vpow2.f32 %v3000_v4  ;;  %v2979_v32 = vmin.f32 %v7322_v29, 0.0  ;;  %v7327_v34 = vpop.f32.mrb[29].mxu0  ;;  %vm2960_vm7 = vcmp.gt.f32.partialorder %v7319_v61, 0.0  ;;  %v3057_v4 = vld [vmem:[%s7760_s5 + $0x38] sm:$0xff] }
 0x3ac   :  { %v6447_v25 = vpop.eup %6446  ;;  %6456 = vpow2.f32 %v2998_v10  ;;  %v2978_v14 = vmin.f32 %v7327_v34, 0.0  ;;  %v7330_v59 = vsel %vm2954_vm11, %v2357_v30, %v5386_v57  ;;  %vm2963_vm11 = vcmp.gt.f32.partialorder %v7322_v29, 0.0 }
 0x3ad   :  { %v6449_v11 = vpop.eup %6448  ;;  %v5389_v56 = vadd.f32 -1.0, %v6447_v25  ;;  %v3004_v13 = vmul.f32 1.442695, %v2979_v32  ;;  %5981 = vmatprep.mubr.msk.f32.mxu0 %vm3058_vm8, %v7330_v59  ;;  %v6331_v15 = vpack.c.bf16 %v7324_v8, %v7330_v59 }
 0x3ae   :  { %v5388_v17 = vadd.f32 -1.0, %v6449_v11  ;;  %v3002_v63 = vmul.f32 1.442695, %v2978_v14  ;;  %v7339_v12 = vpop.f32.mrb[28].mxu1  ;;  %5982 = vmatmul.mubr.msk.f32.vlgmr.msra.gmra.mrb[32].mxu0 %vm3058_vm8, %v7324_v8 }
 0x3af   :  { %v7343_v48 = vsel %vm2957_vm13, %v5936_v39, %v5389_v56  ;;  %6458 = vpow2.f32 %v3004_v13  ;;  %v2981_v53 = vmin.f32 %v7339_v12, 0.0  ;;  %v7346_v1 = vpop.f32.mrb[29].mxu1  ;;  %5990 = vmatpush3.msra.mxu0 %v7301_v27  ;;  %vm2962_vm13 = vcmp.gt.f32.partialorder %v7327_v34, 0.0 }
 0x3b0   :  { %6460 = vpow2.f32 %v3002_v63  ;;  %v2980_v19 = vmin.f32 %v7346_v1, 0.0  ;;  %v7350_v21 = vsel %vm2956_vm14, %v2441_v41, %v5388_v17  ;;  %5999 = vmatprep.subr.mxu0 %v3054_v16  ;;  %vm2965_vm14 = vcmp.gt.f32.partialorder %v7339_v12, 0.0 }
 0x3b1   :  { %v6451_v6 = vpop.eup %6450  ;;  %v3008_v22 = vmul.f32 1.442695, %v2981_v53  ;;  %5986 = vmatprep.mubr.msk.f32.mxu1 %vm3058_vm8, %v7350_v21  ;;  %v6335_v24 = vpack.c.bf16 %v7343_v48, %v7350_v21 }
 0x3b2   :  { %v6453_v9 = vpop.eup %6452  ;;  %v5391_v38 = vadd.f32 -1.0, %v6451_v6  ;;  %v3006_v7 = vmul.f32 1.442695, %v2980_v19  ;;  %v7359_v20 = vpop.f32.mrb[30].mxu0  ;;  %5987 = vmatmul.mubr.msk.f32.vlgmr.msra.gmra.mrb[32].mxu1 %vm3058_vm8, %v7343_v48 }
 0x3b3   :  { %v5390_v27 = vadd.f32 -1.0, %v6453_v9  ;;  %6462 = vpow2.f32 %v3008_v22  ;;  %v2983_v35 = vmin.f32 %v7359_v20, 0.0  ;;  %v7365_v40 = vpop.f32.mrb[31].mxu0  ;;  %5995 = vmatpush3.msra.mxu1 %v7307_v28 }
 0x3b4   :  { %v7369_v30 = vsel %vm2959_vm15, %v7310_v45, %v5391_v38  ;;  %6464 = vpow2.f32 %v3006_v7  ;;  %v2982_v46 = vmin.f32 %v7365_v40, 0.0  ;;  %6004 = vmatprep.subr.mxu1 %v3055_v5  ;;  %vm2964_vm15 = vcmp.gt.f32.partialorder %v7346_v1, 0.0  ;;  %v3740_v7 = vld [vmem:[%s7761_s6 + $0x10] sm:$0xff] }
 0x3b5   :  { %v6455_v52 = vpop.eup %6454  ;;  %v3012_v33 = vmul.f32 1.442695, %v2983_v35  ;;  %v7374_v39 = vsel %vm2958_vm2, %v7313_v49, %v5390_v27  ;;  %vm2967_vm2 = vcmp.gt.f32.partialorder %v7359_v20, 0.0 }
 0x3b6   :  { %v6457_v23 = vpop.eup %6456  ;;  %v5393_v41 = vadd.f32 -1.0, %v6455_v52  ;;  %v3010_v42 = vmul.f32 1.442695, %v2982_v46  ;;  %v7376_v43 = vpop.f32.mrb[30].mxu1  ;;  %5991 = vmatprep.mubr.msk.f32.mxu0 %vm3058_vm8, %v7374_v39  ;;  %v6339_v28 = vpack.c.bf16 %v7369_v30, %v7374_v39  ;;  %v3741_v46 = vld [vmem:[%s7761_s6 + $0x18] sm:$0xff]  ;;  %v3742_v52 = vld [vmem:[%s7761_s6 + $0x20] sm:$0xff] }
 0x3b7   :  { %v5392_v45 = vadd.f32 -1.0, %v6457_v23  ;;  %6466 = vpow2.f32 %v3012_v33  ;;  %v2985_v47 = vmin.f32 %v7376_v43, 0.0  ;;  %v7387_v49 = vpop.f32.mrb[31].mxu1  ;;  %5992 = vmatmul.mubr.msk.f32.vlgmr.msra.gmra.mrb[34].mxu0 %vm3058_vm8, %v7369_v30  ;;  %v3743_v33 = vld [vmem:[%s7761_s6 + $0x28] sm:$0xff]  ;;  %v3744_v23 = vld [vmem:[%s7761_s6 + $0x30] sm:$0xff] }
 0x3b8   :  { %v7392_v51 = vsel %vm2961_vm4, %v7316_v18, %v5393_v41  ;;  %6468 = vpow2.f32 %v3010_v42  ;;  %v2984_v54 = vmin.f32 %v7387_v49, 0.0  ;;  %6000 = vmatpush3.msra.mxu0 %v3054_v16  ;;  %vm2966_vm4 = vcmp.gt.f32.partialorder %v7365_v40, 0.0  ;;  %v3745_v41 = vld [vmem:[%s7761_s6 + $0x38] sm:$0xff] }
 0x3b9   :  { %v6459_v58 = vpop.eup %6458  ;;  %v3016_v60 = vmul.f32 1.442695, %v2985_v47  ;;  %v7397_v2 = vsel %vm2960_vm7, %v7319_v61, %v5392_v45  ;;  %6009 = vmatprep.subr.mxu0 %v3056_v62  ;;  %vm2969_vm7 = vcmp.gt.f32.partialorder %v7376_v43, 0.0 }
 0x3ba   :  { %v6461_v3 = vpop.eup %6460  ;;  %v5395_v31 = vadd.f32 -1.0, %v6459_v58  ;;  %v3014_v26 = vmul.f32 1.442695, %v2984_v54  ;;  %5996 = vmatprep.mubr.msk.f32.mxu1 %vm3058_vm8, %v7397_v2  ;;  %v6343_v18 = vpack.c.bf16 %v7392_v51, %v7397_v2 }
 0x3bb   :  { %v5394_v57 = vadd.f32 -1.0, %v6461_v3  ;;  %6470 = vpow2.f32 %v3016_v60  ;;  %5997 = vmatmul.mubr.msk.f32.vlgmr.msra.gmra.mrb[34].mxu1 %vm3058_vm8, %v7392_v51 }
 0x3bc   :  { %v7410_v61 = vsel %vm2963_vm11, %v7322_v29, %v5395_v31  ;;  %6472 = vpow2.f32 %v3014_v26  ;;  %6005 = vmatpush3.msra.mxu1 %v3055_v5  ;;  %v3738_v29 = vld [vmem:[%s7761_s6] sm:$0xff]  ;;  %vm2968_vm11 = vcmp.gt.f32.partialorder %v7387_v49, 0.0 }
 0x3bd   :  { %v6463_v10 = vpop.eup %6462  ;;  %v7414_v32 = vsel %vm2962_vm13, %v7327_v34, %v5394_v57  ;;  %6014 = vmatprep.subr.mxu1 %v3057_v4  ;;  %vm7521_vm13 = vmpackc.low %vm3058_vm8, %vm3058_vm8 }
 0x3be   :  { %v6465_v25 = vpop.eup %6464  ;;  %v5397_v14 = vadd.f32 -1.0, %v6463_v10  ;;  %6001 = vmatprep.mubr.msk.f32.mxu0 %vm3058_vm8, %v7414_v32  ;;  %v6347_v11 = vpack.c.bf16 %v7410_v61, %v7414_v32 }
 0x3bf   :  { %v5396_v56 = vadd.f32 -1.0, %v6465_v25  ;;  %6002 = vmatmul.mubr.msk.f32.vlgmr.msra.gmra.mrb[36].mxu0 %vm3058_vm8, %v7410_v61 }
 0x3c0   :  { %v7427_v34 = vsel %vm2965_vm14, %v7339_v12, %v5397_v14  ;;  %6010 = vmatpush3.msra.mxu0 %v3056_v62  ;;  %v3739_v12 = vld [vmem:[%s7761_s6 + $0x8] sm:$0xff]  ;;  %vm3722_vm14 = vcmask 257024  }
 0x3c1   :  { %v6467_v13 = vpop.eup %6466  ;;  %v7431_v16 = vsel %vm2964_vm15, %v7346_v1, %v5396_v56  ;;  %6019 = vmatprep.subr.mxu0 %v3738_v29 }
 0x3c2   :  { %v6469_v17 = vpop.eup %6468  ;;  %v5399_v63 = vadd.f32 -1.0, %v6467_v13  ;;  %6006 = vmatprep.mubr.msk.f32.mxu1 %vm3058_vm8, %v7431_v16  ;;  %v6351_v53 = vpack.c.bf16 %v7427_v34, %v7431_v16 }
 0x3c3   :  { %v5398_v19 = vadd.f32 -1.0, %v6469_v17  ;;  %6007 = vmatmul.mubr.msk.f32.vlgmr.msra.gmra.mrb[36].mxu1 %vm3058_vm8, %v7427_v34 }
 0x3c4   :  { %v7444_v1 = vsel %vm2967_vm2, %v7359_v20, %v5399_v63  ;;  %6015 = vmatpush3.msra.mxu1 %v3057_v4 }
 0x3c5   :  { %v6471_v6 = vpop.eup %6470  ;;  %v7448_v22 = vsel %vm2966_vm4, %v7365_v40, %v5398_v19  ;;  %6024 = vmatprep.subr.mxu1 %v3739_v12 }
 0x3c6   :  { %v6473_v5 = vpop.eup %6472  ;;  %v5401_v9 = vadd.f32 -1.0, %v6471_v6  ;;  %6011 = vmatprep.mubr.msk.f32.mxu0 %vm3058_vm8, %v7448_v22  ;;  %v6355_v38 = vpack.c.bf16 %v7444_v1, %v7448_v22 }
 0x3c7   :  { %v5400_v20 = vadd.f32 -1.0, %v6473_v5  ;;  %6012 = vmatmul.mubr.msk.f32.vlgmr.msra.gmra.mrb[38].mxu0 %vm3058_vm8, %v7444_v1 }
 0x3c8   :  { %v7461_v27 = vsel %vm2969_vm7, %v7376_v43, %v5401_v9  ;;  %6021 = vmatprep.mubr.msk.f32.mxu0 %vm3058_vm8, %v7330_v59  ;;  %6020 = vmatpush3.msra.mxu0 %v3738_v29  ;;  %v4379_v59 = vld [vmem:[%s7762_s7 + $0x1] sm:$0x1] }
 0x3c9   :  { %v7467_v35 = vsel %vm2968_vm11, %v7387_v49, %v5400_v20  ;;  %6029 = vmatprep.subr.mxu0 %v3740_v7  ;;  %vm5191_vm11 = vcmask 0  }
 0x3ca   :  { %6016 = vmatprep.mubr.msk.f32.mxu1 %vm3058_vm8, %v7467_v35  ;;  %v6359_v40 = vpack.c.bf16 %v7461_v27, %v7467_v35 }
 0x3cb   :  { %6017 = vmatmul.mubr.msk.f32.vlgmr.msra.gmra.mrb[38].mxu1 %vm3058_vm8, %v7461_v27  ;;  %6022 = vmatmul.mubr.msk.f32.vlgmr.msra.gmra.mrb[40].mxu0 %vm3058_vm8, %v7324_v8  ;;  %v4378_v8 = vld [vmem:[%s7762_s7] sm:$0x1] }
 0x3cc   :  { %6025 = vmatpush3.msra.mxu1 %v3739_v12  ;;  %6026 = vmatprep.mubr.msk.f32.mxu1 %vm3058_vm8, %v7350_v21  ;;  %v4382_v21 = vld [vmem:[%s7762_s7 + $0x4] sm:$0x1] }
 0x3cd   :  { %6031 = vmatprep.mubr.msk.f32.mxu0 %vm3058_vm8, %v7374_v39  ;;  %6030 = vmatpush3.msra.mxu0 %v3740_v7 }
 0x3ce   :  { %6034 = vmatprep.subr.mxu1 %v3741_v46  ;;  %6039 = vmatprep.subr.mxu0 %v3742_v52 }
 0x3cf   :  { %6027 = vmatmul.mubr.msk.f32.vlgmr.msra.gmra.mrb[40].mxu1 %vm3058_vm8, %v7343_v48  ;;  %6032 = vmatmul.mubr.msk.f32.vlgmr.msra.gmra.mrb[42].mxu0 %vm3058_vm8, %v7369_v30  ;;  %v4381_v48 = vld [vmem:[%s7762_s7 + $0x3] sm:$0x1]  ;;  %v4385_v30 = vld [vmem:[%s7762_s7 + $0x7] sm:$0x1] }
 0x3d0   :  { %6035 = vmatpush3.msra.mxu1 %v3741_v46  ;;  %6036 = vmatprep.mubr.msk.f32.mxu1 %vm3058_vm8, %v7397_v2 }
 0x3d1   :  { %6041 = vmatprep.mubr.msk.f32.mxu0 %vm3058_vm8, %v7414_v32  ;;  %6040 = vmatpush3.msra.mxu0 %v3742_v52 }
 0x3d2   :  { %6044 = vmatprep.subr.mxu1 %v3743_v33  ;;  %6049 = vmatprep.subr.mxu0 %v3744_v23 }
 0x3d3   :  { %6037 = vmatmul.mubr.msk.f32.vlgmr.msra.gmra.mrb[42].mxu1 %vm3058_vm8, %v7392_v51  ;;  %6042 = vmatmul.mubr.msk.f32.vlgmr.msra.gmra.mrb[44].mxu0 %vm3058_vm8, %v7410_v61 }
 0x3d4   :  { %6045 = vmatpush3.msra.mxu1 %v3743_v33  ;;  %6050 = vmatpush3.msra.mxu0 %v3744_v23 }
 0x3d5   :  { %6046 = vmatprep.mubr.msk.f32.mxu1 %vm3058_vm8, %v7431_v16  ;;  %6051 = vmatprep.mubr.msk.f32.mxu0 %vm3058_vm8, %v7448_v22 }
 0x3d6   :  { %6054 = vmatprep.subr.mxu1 %v3745_v41  ;;  %6330 = vmatprep.subr.bf16.mxu0 %v6582_v36 }
 0x3d7   :  { %6047 = vmatmul.mubr.msk.f32.vlgmr.msra.gmra.mrb[44].mxu1 %vm3058_vm8, %v7427_v34  ;;  %6052 = vmatmul.mubr.msk.f32.vlgmr.msra.gmra.mrb[46].mxu0 %vm3058_vm8, %v7444_v1 }
 0x3d8   :  { %6055 = vmatpush3.msra.mxu1 %v3745_v41  ;;  %6056 = vmatprep.mubr.msk.f32.mxu1 %vm3058_vm8, %v7467_v35 }
 0x3d9   :  { %6334 = vmatprep.subr.bf16.mxu1 %v6582_v36  ;;  %6063 = vmatprep.mubr.msk.f32.mxu0 %vm6583_vm1, %v6584_v37 }
 0x3db   :  { %6333 = vmatpush3.bf16.xpose.msk.msra.mxu0 %vm7521_vm13, %v6331_v15  ;;  %6057 = vmatmul.mubr.msk.f32.vlgmr.msra.gmra.mrb[46].mxu1 %vm3058_vm8, %v7461_v27  ;;  %v4380_v15 = vld [vmem:[%s7762_s7 + $0x2] sm:$0x1] }
 0x3dc   :  { %6338 = vmatprep.subr.bf16.mxu0 %v6582_v36  ;;  %6070 = vmatprep.mubr.msk.f32.mxu1 %vm6583_vm1, %v6584_v37 }
 0x3df   :  { %6337 = vmatpush3.bf16.xpose.msk.msra.mxu1 %vm7521_vm13, %v6335_v24  ;;  %v4383_v24 = vld [vmem:[%s7762_s7 + $0x5] sm:$0x1] }
 0x3e0   :  { %6342 = vmatprep.subr.bf16.mxu1 %v6582_v36 }
 0x3e2   :  { %6064 = vmatmul.mubr.msk.f32.vlgmr.msra.gmra.mrb[48].mxu0 %vm3058_vm8, %v4378_v8 }
 0x3e3   :  { %6341 = vmatpush3.bf16.xpose.msk.msra.mxu0 %vm7521_vm13, %v6339_v28  ;;  %6077 = vmatprep.mubr.msk.f32.mxu0 %vm6583_vm1, %v6584_v37 }
 0x3e4   :  { %6346 = vmatprep.subr.bf16.mxu0 %v6582_v36 }
 0x3e6   :  { %6071 = vmatmul.mubr.msk.f32.vlgmr.msra.gmra.mrb[48].mxu1 %vm3058_vm8, %v4379_v59 }
 0x3e7   :  { %6345 = vmatpush3.bf16.xpose.msk.msra.mxu1 %vm7521_vm13, %v6343_v18  ;;  %6084 = vmatprep.mubr.msk.f32.mxu1 %vm6583_vm1, %v6584_v37 }
 0x3e8   :  { %6350 = vmatprep.subr.bf16.mxu1 %v6582_v36 }
 0x3ea   :  { %6078 = vmatmul.mubr.msk.f32.vlgmr.msra.gmra.mrb[50].mxu0 %vm3058_vm8, %v4380_v15 }
 0x3eb   :  { %6349 = vmatpush3.bf16.xpose.msk.msra.mxu0 %vm7521_vm13, %v6347_v11  ;;  %6091 = vmatprep.mubr.msk.f32.mxu0 %vm6583_vm1, %v6584_v37 }
 0x3ec   :  { %6354 = vmatprep.subr.bf16.mxu0 %v6582_v36 }
 0x3ee   :  { %6085 = vmatmul.mubr.msk.f32.vlgmr.msra.gmra.mrb[50].mxu1 %vm3058_vm8, %v4381_v48 }
 0x3ef   :  { %6353 = vmatpush3.bf16.xpose.msk.msra.mxu1 %vm7521_vm13, %v6351_v53  ;;  %6098 = vmatprep.mubr.msk.f32.mxu1 %vm6583_vm1, %v6584_v37 }
 0x3f0   :  { %6358 = vmatprep.subr.bf16.mxu1 %v6582_v36  ;;  %v4384_v36 = vld [vmem:[%s7762_s7 + $0x6] sm:$0x1] }
 0x3f2   :  { %6092 = vmatmul.mubr.msk.f32.vlgmr.msra.gmra.mrb[52].mxu0 %vm3058_vm8, %v4382_v21 }
 0x3f3   :  { %6357 = vmatpush3.bf16.xpose.msk.msra.mxu0 %vm7521_vm13, %v6355_v38  ;;  %6105 = vmatprep.mubr.msk.f32.mxu0 %vm6583_vm1, %v6584_v37 }
 0x3f6   :  { %6099 = vmatmul.mubr.msk.f32.vlgmr.msra.gmra.mrb[52].mxu1 %vm3058_vm8, %v4383_v24 }
 0x3f7   :  { %6361 = vmatpush3.bf16.xpose.msk.msra.mxu1 %vm7521_vm13, %v6359_v40  ;;  %6112 = vmatprep.mubr.msk.f32.mxu1 %vm6583_vm1, %v6584_v37  ;;  %vm4362_vm1 = vcmask 3072  }
 0x3fa   :  { %6106 = vmatmul.mubr.msk.f32.vlgmr.msra.gmra.mrb[54].mxu0 %vm3058_vm8, %v4384_v36 }
 0x3fe   :  { %6113 = vmatmul.mubr.msk.f32.vlgmr.msra.gmra.mrb[54].mxu1 %vm3058_vm8, %v4385_v30  ;;  %vm4346_vm8 = vcmask 7168  }
 0x481   :  { %v5983_v39 = vpop.f32.mrb[32].mxu0 }
 0x482   :  { %v3131_v43 = vpop.f32.mrb[33].mxu0  ;;  %v3723_v62 = vsel %vm3722_vm14, %v5983_v39, 0.0 }
 0x483   :  { %v3707_v49 = vsel %vm76_vm0, %v3131_v43, 0.0 }
 0x485   :  { %v5988_v28 = vpop.f32.mrb[32].mxu1 }
 0x486   :  { %v3724_v45 = vsel %vm3722_vm14, %v5988_v28, 0.0  ;;  %v3212_v47 = vpop.f32.mrb[33].mxu1 }
 0x487   :  { %v3725_v37 = vadd.f32 %v3724_v45, %v3723_v62  ;;  %v3708_v51 = vsel %vm76_vm0, %v3212_v47, 0.0 }
 0x488   :  { %v3709_v54 = vadd.f32 %v3708_v51, %v3707_v49 }
 0x48a   :  { %v5993_v58 = vpop.f32.mrb[34].mxu0 }
 0x48b   :  { %v3726_v60 = vsel %vm3722_vm14, %v5993_v58, 0.0  ;;  %v3293_v2 = vpop.f32.mrb[35].mxu0 }
 0x48c   :  { %v3727_v3 = vadd.f32 %v3726_v60, %v3725_v37  ;;  %v3710_v31 = vsel %vm76_vm0, %v3293_v2, 0.0 }
 0x48d   :  { %v3711_v26 = vadd.f32 %v3710_v31, %v3709_v54 }
 0x48e   :  { %v5998_v18 = vpop.f32.mrb[34].mxu1 }
 0x48f   :  { %v3728_v4 = vsel %vm3722_vm14, %v5998_v18, 0.0  ;;  %v3374_v57 = vpop.f32.mrb[35].mxu1 }
 0x490   :  { %v3729_v61 = vadd.f32 %v3728_v4, %v3727_v3  ;;  %v3712_v10 = vsel %vm76_vm0, %v3374_v57, 0.0 }
 0x491   :  { %v3713_v32 = vadd.f32 %v3712_v10, %v3711_v26 }
 0x492   :  { %v6003_v25 = vpop.f32.mrb[36].mxu0 }
 0x493   :  { %v3730_v14 = vsel %vm3722_vm14, %v6003_v25, 0.0  ;;  %v3455_v11 = vpop.f32.mrb[37].mxu0 }
 0x494   :  { %v3731_v29 = vadd.f32 %v3730_v14, %v3729_v61  ;;  %v3714_v56 = vsel %vm76_vm0, %v3455_v11, 0.0 }
 0x495   :  { %v3715_v34 = vadd.f32 %v3714_v56, %v3713_v32 }
 0x496   :  { %v6008_v13 = vpop.f32.mrb[36].mxu1 }
 0x497   :  { %v3732_v16 = vsel %vm3722_vm14, %v6008_v13, 0.0  ;;  %v3536_v17 = vpop.f32.mrb[37].mxu1 }
 0x498   :  { %v3733_v63 = vadd.f32 %v3732_v16, %v3731_v29  ;;  %v3716_v53 = vsel %vm76_vm0, %v3536_v17, 0.0 }
 0x499   :  { %v3717_v12 = vadd.f32 %v3716_v53, %v3715_v34 }
 0x49a   :  { %v6013_v19 = vpop.f32.mrb[38].mxu0 }
 0x49b   :  { %v3734_v1 = vsel %vm3722_vm14, %v6013_v19, 0.0  ;;  %v3617_v6 = vpop.f32.mrb[39].mxu0 }
 0x49c   :  { %v3735_v22 = vadd.f32 %v3734_v1, %v3733_v63  ;;  %v3718_v5 = vsel %vm76_vm0, %v3617_v6, 0.0 }
 0x49d   :  { %v3719_v9 = vadd.f32 %v3718_v5, %v3717_v12 }
 0x49e   :  { %v6018_v38 = vpop.f32.mrb[38].mxu1  ;;  %v6023_v7 = vpop.f32.mrb[40].mxu0 }
 0x49f   :  { %v3736_v20 = vsel %vm3722_vm14, %v6018_v38, 0.0  ;;  %v3698_v27 = vpop.f32.mrb[39].mxu1  ;;  %v3812_v35 = vpop.f32.mrb[41].mxu0  ;;  %v4363_v41 = vsel %vm4362_vm1, %v6023_v7, 0.0 }
 0x4a0   :  { %v3737_v40 = vadd.f32 %v3736_v20, %v3735_v22  ;;  %v3720_v46 = vsel %vm76_vm0, %v3698_v27, 0.0  ;;  %v4347_v48 = vsel %vm4346_vm8, %v3812_v35, 0.0 }
 0x4a1   :  { %v3721_v52 = vadd.f32 %v3720_v46, %v3719_v9 }
 0x4a2   :  { %v6028_v33 = vpop.f32.mrb[40].mxu1  ;;  %v6033_v23 = vpop.f32.mrb[42].mxu0 }
 0x4a3   :  { %v6362_v42 = vpack.c.bf16 %v3737_v40, %v3721_v52  ;;  %v4364_v8 = vsel %vm4362_vm1, %v6028_v33, 0.0  ;;  %v3887_v59 = vpop.f32.mrb[41].mxu1  ;;  %v3962_v15 = vpop.f32.mrb[43].mxu0  ;;  %v4366_v36 = vsel %vm4362_vm1, %v6033_v23, 0.0 }
 0x4a4   :  { %v4365_v21 = vadd.f32 %v4364_v8, %v4363_v41  ;;  %v4348_v24 = vsel %vm4346_vm8, %v3887_v59, 0.0  ;;  %v4350_v43 = vsel %vm4346_vm8, %v3962_v15, 0.0 }
 0x4a5   :  { %v4349_v30 = vadd.f32 %v4348_v24, %v4347_v48  ;;  %6364 = vmatprep.subr.msk.bf16.mxu0 %vm6997_vm5, %v6362_v42 }
 0x4a6   :  { %v4367_v39 = vadd.f32 %v4366_v36, %v4365_v21  ;;  %v6038_v28 = vpop.f32.mrb[42].mxu1  ;;  %v6043_v62 = vpop.f32.mrb[44].mxu0  ;;  %6367 = vmatpush3.bf16.msk.msra.mxu0 %vm6997_vm5, %v6362_v42  ;;  %vm4970_vm5 = vcmask 90112  }
 0x4a7   :  { %v4351_v45 = vadd.f32 %v4350_v43, %v4349_v30  ;;  %v4368_v47 = vsel %vm4362_vm1, %v6038_v28, 0.0  ;;  %v4037_v49 = vpop.f32.mrb[43].mxu1  ;;  %v4112_v37 = vpop.f32.mrb[45].mxu0  ;;  %v4370_v58 = vsel %vm4362_vm1, %v6043_v62, 0.0 }
 0x4a8   :  { %v4369_v51 = vadd.f32 %v4368_v47, %v4367_v39  ;;  %v4352_v54 = vsel %vm4346_vm8, %v4037_v49, 0.0  ;;  %v4354_v3 = vsel %vm4346_vm8, %v4112_v37, 0.0 }
 0x4a9   :  { %v4353_v60 = vadd.f32 %v4352_v54, %v4351_v45 }
 0x4aa   :  { %v4371_v2 = vadd.f32 %v4370_v58, %v4369_v51  ;;  %v6048_v31 = vpop.f32.mrb[44].mxu1  ;;  %v6053_v26 = vpop.f32.mrb[46].mxu0 }
 0x4ab   :  { %v4355_v18 = vadd.f32 %v4354_v3, %v4353_v60  ;;  %v4372_v50 = vsel %vm4362_vm1, %v6048_v31, 0.0  ;;  %v4187_v4 = vpop.f32.mrb[45].mxu1  ;;  %v4262_v57 = vpop.f32.mrb[47].mxu0  ;;  %v4374_v32 = vsel %vm4362_vm1, %v6053_v26, 0.0 }
 0x4ac   :  { %v4373_v61 = vadd.f32 %v4372_v50, %v4371_v2  ;;  %v4356_v10 = vsel %vm4346_vm8, %v4187_v4, 0.0  ;;  %v4358_v11 = vsel %vm4346_vm8, %v4262_v57, 0.0 }
 0x4ad   :  { %v4357_v25 = vadd.f32 %v4356_v10, %v4355_v18 }
 0x4ae   :  { %v4375_v14 = vadd.f32 %v4374_v32, %v4373_v61  ;;  %v6058_v29 = vpop.f32.mrb[46].mxu1 }
 0x4af   :  { %v4359_v56 = vadd.f32 %v4358_v11, %v4357_v25  ;;  %v4376_v34 = vsel %vm4362_vm1, %v6058_v29, 0.0  ;;  %v4337_v13 = vpop.f32.mrb[47].mxu1 }
 0x4b0   :  { %v4377_v16 = vadd.f32 %v4376_v34, %v4375_v14  ;;  %v4360_v17 = vsel %vm4346_vm8, %v4337_v13, 0.0 }
 0x4b1   :  { %v4361_v63 = vadd.f32 %v4360_v17, %v4359_v56 }
 0x4b2   :  { %4993 = vperm.xlu0 %6376, %v4377_v16  }
 0x4b3   :  { %4988 = vperm.xlu1 %6377, %v4361_v63  }
 0x4b5   :  { %v4455_v53 = vpop.f32.mrb[48].mxu0 }
 0x4b6   :  { %v6065_v12 = vpop.f32.mrb[49].mxu0  ;;  %v4971_v19 = vsel %vm4970_vm5, %v4455_v53, 0.0 }
 0x4b9   :  { %v4528_v1 = vpop.f32.mrb[48].mxu1 }
 0x4ba   :  { %v4972_v6 = vsel %vm4970_vm5, %v4528_v1, 0.0  ;;  %v6072_v22 = vpop.f32.mrb[49].mxu1 }
 0x4bb   :  { %v4973_v5 = vadd.f32 %v4972_v6, %v4971_v19 }
 0x4bd   :  { %v4601_v9 = vpop.f32.mrb[50].mxu0 }
 0x4be   :  { %v4974_v38 = vsel %vm4970_vm5, %v4601_v9, 0.0  ;;  %v6079_v7 = vpop.f32.mrb[51].mxu0 }
 0x4bf   :  { %v4975_v20 = vadd.f32 %v4974_v38, %v4973_v5 }
 0x4c1   :  { %v4674_v27 = vpop.f32.mrb[50].mxu1 }
 0x4c2   :  { %v4976_v35 = vsel %vm4970_vm5, %v4674_v27, 0.0  ;;  %v6086_v40 = vpop.f32.mrb[51].mxu1 }
 0x4c3   :  { %v4977_v46 = vadd.f32 %v4976_v35, %v4975_v20 }
 0x4c5   :  { %v4747_v52 = vpop.f32.mrb[52].mxu0 }
 0x4c6   :  { %v4978_v33 = vsel %vm4970_vm5, %v4747_v52, 0.0  ;;  %v6093_v23 = vpop.f32.mrb[53].mxu0 }
 0x4c7   :  { %v4979_v41 = vadd.f32 %v4978_v33, %v4977_v46  ;;  %v6510_v33 = vld [vmem:[%s7755_s0 + $0x8] sm:$0xf] }
 0x4c8   :  { %v5168_v23 = vmul.f32 %v6510_v33, %v6510_v33 }
 0x4c9   :  { %v4820_v42 = vpop.f32.mrb[52].mxu1 }
 0x4ca   :  { %v4980_v8 = vsel %vm4970_vm5, %v4820_v42, 0.0  ;;  %v6100_v59 = vpop.f32.mrb[53].mxu1  ;;  %v5152_v42 = vld [vmem:[%s7756_s1] sm:$0xf] }
 0x4cb   :  { %v4981_v15 = vadd.f32 %v4980_v8, %v4979_v41 }
 0x4cd   :  { %v4893_v48 = vpop.f32.mrb[54].mxu0 }
 0x4ce   :  { %v4982_v21 = vsel %vm4970_vm5, %v4893_v48, 0.0  ;;  %v6107_v24 = vpop.f32.mrb[55].mxu0  ;;  %v5169_v48 = vsel %vm3722_vm14, %v5168_v23, 0.0 }
 0x4cf   :  { %v4983_v36 = vadd.f32 %v4982_v21, %v4981_v15  ;;  %v5157_v21 = vmul.f32 %v5152_v42, %v5152_v42 }
 0x4d1   :  { %v4966_v30 = vpop.f32.mrb[54].mxu1  ;;  %v5158_v24 = vsel %vm3722_vm14, %v5157_v21, 0.0 }
 0x4d2   :  { %v4984_v39 = vsel %vm4970_vm5, %v4966_v30, 0.0  ;;  %v6114_v43 = vpop.f32.mrb[55].mxu1 }
 0x4d3   :  { %v4985_v28 = vadd.f32 %v4984_v39, %v4983_v36  ;;  %v6511_v36 = vld [vmem:[%s7755_s0] sm:$0xff]  ;;  %v5153_v43 = vmul.f32 %v6510_v33, %v5152_v42 }
 0x4d4   :  { %v5236_v30 = vmul.f32 %v6511_v36, %v6511_v36 }
 0x4d5   :  { %v4999_v62 = vrot.slane %v4985_v28, %v7033_v44  ;;  %v5154_v28 = vsel %vm3722_vm14, %v5153_v43, 0.0 }
 0x4d6   :  { %v5237_v39 = vsel %vm76_vm0, %v5236_v30, 0.0 }
 0x531   :  { %v4994_v45 = vpop.permute.xlu0 %4993 }
 0x532   :  { %v5001_v47 = vadd.f32 %v4999_v62, %v4994_v45  ;;  %v4989_v49 = vpop.permute.xlu1 %4988 }
 0x533   :  { %v5000_v37 = vadd.f32 %v4999_v62, %v4989_v49 }
 0x534   :  { %v5005_v51 = vmul.f32 0.2, %v5001_v47  ;;  %vm5003_vm15 = vcmp.gt.f32.partialorder %v5001_v47, 0.0 }
 0x535   :  { %v5004_v54 = vmul.f32 0.2, %v5000_v37  ;;  %vm5002_vm2 = vcmp.gt.f32.partialorder %v5000_v37, 0.0 }
 0x536   :  { %v5007_v58 = vsel %vm5003_vm15, %v5001_v47, %v5005_v51 }
 0x537   :  { %v5009_v60 = vsel %vm7037_vm6, %v5007_v58, -9e+15  ;;  %v5006_v2 = vsel %vm5002_vm2, %v5000_v37, %v5004_v54 }
 0x538   :  { %v5013_v3 = vsel %vm2107_vm9, %v5009_v60, -inf  ;;  %v5008_v31 = vsel %vm7041_vm10, %v5006_v2, -9e+15 }
 0x539   :  { %5014 = vmax.xlane.f32.xlu0 %v5013_v3  ;;  %v5010_v44 = vsel %vm2103_vm12, %v5008_v31, -inf }
 0x53a   :  { %5011 = vmax.xlane.f32.xlu1 %v5010_v44 }
 0x5c6   :  { %v5015_v26 = vpop.xlane.xlu0 %5014 }
 0x5c7   :  { %v5017_v18 = vsub.f32 %v5009_v60, %v5015_v26  ;;  %v5012_v50 = vpop.xlane.xlu1 %5011 }
 0x5c8   :  { %v5016_v4 = vsub.f32 %v5008_v31, %v5012_v50 }
 0x5c9   :  { %v5020_v57 = vmul.f32 1.442695, %v5017_v18 }
 0x5ca   :  { %v5018_v61 = vmul.f32 1.442695, %v5016_v4 }
 0x5cb   :  { %6474 = vpow2.f32 %v5020_v57 }
 0x5cc   :  { %6476 = vpow2.f32 %v5018_v61 }
 0x5d5   :  { %v6475_v55 = vpop.eup %6474 }
 0x5d6   :  { %v6477_v10 = vpop.eup %6476  ;;  %v5025_v32 = vsel %vm2107_vm9, %v6475_v55, 0.0 }
 0x5d7   :  { %5026 = vadd.xlane.f32.xlu0 %v5025_v32  ;;  %v5022_v0 = vsel %vm2103_vm12, %v6477_v10, 0.0 }
 0x5d8   :  { %5023 = vadd.xlane.f32.xlu1 %v5022_v0 }
 0x664   :  { %v5027_v25 = vpop.xlane.xlu0 %5026 }
 0x665   :  { %6478 = vrcp.f32 %v5027_v25  ;;  %v5024_v14 = vpop.xlane.xlu1 %5023 }
 0x666   :  { %6480 = vrcp.f32 %v5024_v14 }
 0x66f   :  { %v6479_v11 = vpop.eup %6478 }
 0x670   :  { %v6481_v29 = vpop.eup %6480  ;;  %v5031_v34 = vmul.f32 %v6479_v11, %v6475_v55 }
 0x671   :  { %v5030_v56 = vmul.f32 %v6481_v29, %v6477_v10 }
 0x673   :  { %6119 = vmatprep.mubr.msk.f32.mxu0 %vm2103_vm12, %v5030_v56 }
 0x674   :  { %6120 = vmatmul.mubr.msk.f32.vlgmr.msra.gmra.mrb[56].mxu0 %vm2103_vm12, %v5031_v34 }
 0x747   :  { %v6121_v13 = vpop.f32.mrb[56].mxu0 }
 0x748   :  { %v5119_v16 = vmin.f32 %v6121_v13, 0.0  ;;  %v5107_v17 = vpop.f32.mrb[57].mxu0  ;;  %vm5117_vm6 = vcmp.gt.f32.partialorder %v6121_v13, 0.0 }
 0x749   :  { %v5118_v63 = vmin.f32 %v5107_v17, 0.0  ;;  %vm5116_vm9 = vcmp.gt.f32.partialorder %v5107_v17, 0.0 }
 0x74a   :  { %v5122_v53 = vmul.f32 1.442695, %v5119_v16 }
 0x74b   :  { %v5120_v12 = vmul.f32 1.442695, %v5118_v63 }
 0x74c   :  { %6482 = vpow2.f32 %v5122_v53 }
 0x74d   :  { %6484 = vpow2.f32 %v5120_v12 }
 0x756   :  { %v6483_v19 = vpop.eup %6482 }
 0x757   :  { %v6485_v1 = vpop.eup %6484  ;;  %v5462_v6 = vadd.f32 -1.0, %v6483_v19 }
 0x758   :  { %v5461_v22 = vadd.f32 -1.0, %v6485_v1 }
 0x759   :  { %v5127_v5 = vsel %vm5117_vm6, %v6121_v13, %v5462_v6 }
 0x75a   :  { %v5131_v9 = vsel %vm3722_vm14, %v5127_v5, -inf  ;;  %v5126_v38 = vsel %vm5116_vm9, %v5107_v17, %v5461_v22 }
 0x75b   :  { %5132 = vmax.xlane.f32.xlu1 %v5131_v9  ;;  %v5128_v7 = vsel %vm76_vm0, %v5126_v38, -inf }
 0x75c   :  { %5129 = vmax.xlane.f32.xlu0 %v5128_v7 }
 0x7e8   :  { %v5133_v20 = vpop.xlane.xlu1 %5132 }
 0x7e9   :  { %v5135_v27 = vsub.f32 %v5127_v5, %v5133_v20  ;;  %v5130_v35 = vpop.xlane.xlu0 %5129 }
 0x7ea   :  { %v5134_v40 = vsub.f32 %v5126_v38, %v5130_v35 }
 0x7eb   :  { %v5138_v46 = vmul.f32 1.442695, %v5135_v27 }
 0x7ec   :  { %v5136_v52 = vmul.f32 1.442695, %v5134_v40 }
 0x7ed   :  { %6486 = vpow2.f32 %v5138_v46 }
 0x7ee   :  { %6488 = vpow2.f32 %v5136_v52 }
 0x7f7   :  { %v6487_v41 = vpop.eup %6486 }
 0x7f8   :  { %v6489_v8 = vpop.eup %6488  ;;  %v5143_v59 = vsel %vm3722_vm14, %v6487_v41, 0.0 }
 0x7f9   :  { %5144 = vadd.xlane.f32.xlu1 %v5143_v59  ;;  %v5140_v15 = vsel %vm76_vm0, %v6489_v8, 0.0 }
 0x7fa   :  { %5141 = vadd.xlane.f32.xlu0 %v5140_v15 }
 0x7fd   :  { %5170 = vadd.xlane.f32.xlu1 %v5169_v48 }
 0x801   :  { %5159 = vadd.xlane.f32.xlu1 %v5158_v24 }
 0x805   :  { %5238 = vadd.xlane.f32.xlu1 %v5237_v39 }
 0x809   :  { %5155 = vadd.xlane.f32.xlu1 %v5154_v28 }
 0x886   :  { %v5145_v62 = vpop.xlane.xlu1 %5144 }
 0x887   :  { %6490 = vlog2.f32 %v5145_v62  ;;  %v5142_v45 = vpop.xlane.xlu0 %5141 }
 0x888   :  { %6492 = vlog2.f32 %v5142_v45 }
 0x88a   :  { %v5171_v47 = vpop.xlane.xlu1 %5170 }
 0x88b   :  { %6494 = vrsqrt.f32 %v5171_v47  ;;  %vm5174_vm10 = vcmp.eq.f32.partialorder %v5171_v47, inf  ;;  %v5177_v55 = vand.u32 2147483648, %v5171_v47  ;;  %vm5176_vm4 = vcmp.eq.f32.partialorder %v5171_v47, 0.0 }
 0x88e   :  { %v5160_v49 = vpop.xlane.xlu1 %5159 }
 0x88f   :  { %6496 = vrsqrt.f32 %v5160_v49  ;;  %vm5163_vm12 = vcmp.eq.f32.partialorder %v5160_v49, inf  ;;  %v5166_v10 = vand.u32 2147483648, %v5160_v49  ;;  %vm5165_vm7 = vcmp.eq.f32.partialorder %v5160_v49, 0.0 }
 0x891   :  { %v6491_v37 = vpop.eup %6490 }
 0x892   :  { %v6493_v51 = vpop.eup %6492  ;;  %v5149_v54 = vmul.f32 0.6931472, %v6491_v37  ;;  %v5239_v16 = vpop.xlane.xlu1 %5238 }
 0x893   :  { %v5147_v58 = vmul.f32 0.6931472, %v6493_v51 }
 0x894   :  { %v5151_v60 = vsub.f32 %v5135_v27, %v5149_v54 }
 0x895   :  { %v5150_v2 = vsub.f32 %v5134_v40, %v5147_v58  ;;  %v6495_v3 = vpop.eup %6494 }
 0x896   :  { %5260 = vst.msk [vmem:[%s7763_s8 + $0x8] sm:$0xf] %vm3722_vm14, %v5151_v60  ;;  %v5197_v31 = vmul.f32 %v5151_v60, %v5151_v60  ;;  %v5173_v50 = vmul.f32 %v6495_v3, %v5171_v47  ;;  %v5193_v61 = vmul.f32 %v6510_v33, %v5151_v60  ;;  %v5156_v17 = vpop.xlane.xlu1 %5155 }
 0x897   :  { %5259 = vst.msk [vmem:[%s7763_s8] sm:$0xff] %vm76_vm0, %v5150_v2  ;;  %v5225_v26 = vmul.f32 %v5150_v2, %v5150_v2  ;;  %v5221_v14 = vmul.f32 %v6511_v36, %v5150_v2  ;;  %s6587_s8 = smov [#allocation2]  }
 0x898   :  { %v5198_v44 = vsel %vm3722_vm14, %v5197_v31, 0.0  ;;  %v5175_v32 = vsel %vm5174_vm10, %v5171_v47, %v5173_v50  ;;  %v5194_v25 = vsel %vm3722_vm14, %v5193_v61, 0.0  ;;  %s5269_s2 = sshll.u32 %s6587_s8, 4  ;;  %s5270_s2 = int_to_ptr.vmem [resolvable:$true] %s5269_s2 }
 0x899   :  { %v6497_v18 = vpop.eup %6496  ;;  %5199 = vadd.xlane.f32.xlu0 %v5198_v44  ;;  %v5226_v57 = vsel %vm76_vm0, %v5225_v26, 0.0  ;;  %v5178_v29 = vsel %vm5176_vm4, %v5177_v55, %v5175_v32  ;;  %v5222_v13 = vsel %vm76_vm0, %v5221_v14, 0.0  ;;  %s6512_s6 = scalar_lea.vmem %s5270_s2, 16  ;;  %s6516_s14 = scalar_lea.vmem %s5270_s2, 32 }
 0x89a   :  { %v5162_v4 = vmul.f32 %v6497_v18, %v5160_v49  ;;  %p6513_p0 = scmp.ne.s32.totalorder %s5270_s2, %s6512_s6  ;;  %p6517_p1 = scmp.lt.s32.totalorder %s5270_s2, %s5270_s2 }
 0x89b   :  { %p6518_p2 = scmp.lt.s32.totalorder %s6516_s14, %s6512_s6 }
 0x89c   :  { %v5164_v0 = vsel %vm5163_vm12, %v5160_v49, %v5162_v4 }
 0x89d   :  { %5227 = vadd.xlane.f32.xlu0 %v5226_v57  ;;  %v5167_v11 = vsel %vm5165_vm7, %v5166_v10, %v5164_v0  ;;  %p6519_p3 = por %p6518_p2, %p6517_p1 }
 0x89e   :  { %v5179_v56 = vmul.f32 %v5178_v29, %v5167_v11 }
 0x89f   :  { %p6520_p4 = pnand %p6519_p3, %p6513_p0 }
 0x8a0   :  { %v5180_v34 = vmax.f32 %v5179_v56, 1e-08 }
 0x8a1   :  { %5195 = vadd.xlane.f32.xlu0 %v5194_v25 }
 0x8a2   :  { %6498 = vrcp.f32 %v5180_v34 }
 0x8a5   :  { %5223 = vadd.xlane.f32.xlu0 %v5222_v13 }
 0x8ac   :  { %v6499_v63 = vpop.eup %6498 }
 0x8ad   :  { %v5182_v53 = vmul.f32 %v6499_v63, %v5156_v17 }
 0x8af   :  { %v5183_v12 = vsel %vm2287_vm3, %v5182_v53, 0.0 }
 0x8b0   :  { %v5184_v19 = vrot.slane %v5183_v12, 4 }
 0x8b2   :  { %v5185_v1 = vadd.f32 %v5184_v19, %v5183_v12 }
 0x8b4   :  { %v5186_v6 = vrot.slane %v5185_v1, 2 }
 0x8b6   :  { %v5187_v22 = vadd.f32 %v5186_v6, %v5185_v1 }
 0x8b8   :  { %v5188_v5 = vrot.slane %v5187_v22, 1 }
 0x8ba   :  { %v5189_v9 = vadd.f32 %v5188_v5, %v5187_v22 }
 0x8bc   :  { %v5190_v38 = vmul.f32 0.25, %v5189_v9 }
 0x8be   :  { %5192 = vst.msk [vmem:[#allocation2] sm:$0x1] %vm5191_vm11, %v5190_v38 }
 0x8bf   :  { %6523 = shalt.err (!%p6520_p4)
}
 0x8c0   :  { %s6524_s17 = scalar_lea.hbm %s7764_s9, 16 }
 0x8c1   :  { %p6525_p5 = scmp.ne.s32.totalorder %s7764_s9, %s6524_s17  ;;  %p6528_p6 = scmp.lt.u32.totalorder %s6524_s17, %s7764_s9 }
 0x8c3   :  { %p6530_p7 = pnand %p6528_p6, %p6525_p5 }
 0x8c5   :  { %6533 = shalt.err (!%p6530_p7)
}
 0x8c6   :  { %5272 = dma.vmem_to_hbm [thread:$0]  %s5270_s2, 16, %s7764_s9, [#allocation3]   ;;  %6500 = vrsqrt.f32 %v5239_v16  ;;  %vm5242_vm0 = vcmp.eq.f32.partialorder %v5239_v16, inf  ;;  %v5245_v41 = vand.u32 2147483648, %v5239_v16  ;;  %vm5244_vm1 = vcmp.eq.f32.partialorder %v5239_v16, 0.0 }
 0x8c7   :  { %s6588_s9 = smov [#allocation4]   ;;  %s6589_s24 = smov [#allocation6]  }
 0x8c8   :  { %s5279_s23 = sshll.u32 %s6588_s9, 4  ;;  %s5289_s25 = sshll.u32 %s6589_s24, 4  ;;  %s5280_s23 = int_to_ptr.vmem [resolvable:$true] %s5279_s23  ;;  %s7722_s25 = int_to_ptr.vmem [resolvable:$true] %s5289_s25 }
 0x8c9   :  { %s6534_s26 = scalar_lea.vmem %s5280_s23, 16  ;;  %s6538_s4 = scalar_lea.vmem %s5280_s23, 32 }
 0x8ca   :  { %p6535_p8 = scmp.ne.s32.totalorder %s5280_s23, %s6534_s26  ;;  %p6539_p9 = scmp.lt.s32.totalorder %s5280_s23, %s5280_s23 }
 0x8cb   :  { %p6540_p10 = scmp.lt.s32.totalorder %s6538_s4, %s6534_s26 }
 0x8cd   :  { %p6541_p11 = por %p6540_p10, %p6539_p9 }
 0x8cf   :  { %p6542_p12 = pnand %p6541_p11, %p6535_p8 }
 0x8d0   :  { %v6501_v27 = vpop.eup %6500 }
 0x8d1   :  { %v5241_v40 = vmul.f32 %v6501_v27, %v5239_v16 }
 0x8d3   :  { %v5243_v8 = vsel %vm5242_vm0, %v5239_v16, %v5241_v40 }
 0x8d4   :  { %v5246_v30 = vsel %vm5244_vm1, %v5245_v41, %v5243_v8 }
 0x926   :  { %v5200_v7 = vpop.xlane.xlu0 %5199 }
 0x927   :  { %6502 = vrsqrt.f32 %v5200_v7  ;;  %vm5203_vm13 = vcmp.eq.f32.partialorder %v5200_v7, inf  ;;  %v5206_v52 = vand.u32 2147483648, %v5200_v7  ;;  %vm5205_vm14 = vcmp.eq.f32.partialorder %v5200_v7, 0.0 }
 0x92a   :  { %v5228_v20 = vpop.xlane.xlu0 %5227 }
 0x92b   :  { %6504 = vrsqrt.f32 %v5228_v20  ;;  %vm5231_vm8 = vcmp.eq.f32.partialorder %v5228_v20, inf  ;;  %v5234_v48 = vand.u32 2147483648, %v5228_v20  ;;  %vm5233_vm5 = vcmp.eq.f32.partialorder %v5228_v20, 0.0 }
 0x92e   :  { %v5196_v28 = vpop.xlane.xlu0 %5195 }
 0x931   :  { %v6503_v35 = vpop.eup %6502 }
 0x932   :  { %v5202_v46 = vmul.f32 %v6503_v35, %v5200_v7  ;;  %v5224_v51 = vpop.xlane.xlu0 %5223 }
 0x934   :  { %v5204_v33 = vsel %vm5203_vm13, %v5200_v7, %v5202_v46 }
 0x935   :  { %v6505_v23 = vpop.eup %6504  ;;  %v5207_v42 = vsel %vm5205_vm14, %v5206_v52, %v5204_v33 }
 0x936   :  { %v5230_v59 = vmul.f32 %v6505_v23, %v5228_v20  ;;  %v5208_v15 = vmul.f32 %v5207_v42, %v5178_v29 }
 0x938   :  { %v5232_v21 = vsel %vm5231_vm8, %v5228_v20, %v5230_v59  ;;  %v5209_v24 = vmax.f32 %v5208_v15, 1e-08 }
 0x939   :  { %v5235_v36 = vsel %vm5233_vm5, %v5234_v48, %v5232_v21 }
 0x93a   :  { %6506 = vrcp.f32 %v5209_v24  ;;  %v5247_v39 = vmul.f32 %v5246_v30, %v5235_v36 }
 0x93c   :  { %v5248_v43 = vmax.f32 %v5247_v39, 1e-08 }
 0x93e   :  { %6508 = vrcp.f32 %v5248_v43 }
 0x944   :  { %v6507_v62 = vpop.eup %6506 }
 0x945   :  { %v5211_v45 = vmul.f32 %v6507_v62, %v5196_v28 }
 0x947   :  { %v5212_v47 = vsel %vm2287_vm3, %v5211_v45, 0.0 }
 0x948   :  { %v6509_v49 = vpop.eup %6508  ;;  %v5213_v37 = vrot.slane %v5212_v47, 4 }
 0x949   :  { %v5250_v54 = vmul.f32 %v6509_v49, %v5224_v51 }
 0x94a   :  { %v5214_v58 = vadd.f32 %v5213_v37, %v5212_v47 }
 0x94b   :  { %v5251_v60 = vrot.slane %v5250_v54, 4 }
 0x94c   :  { %v5215_v2 = vrot.slane %v5214_v58, 2 }
 0x94d   :  { %v5252_v3 = vadd.f32 %v5251_v60, %v5250_v54 }
 0x94e   :  { %v5216_v31 = vadd.f32 %v5215_v2, %v5214_v58 }
 0x94f   :  { %v5253_v44 = vrot.slane %v5252_v3, 2 }
 0x950   :  { %v5217_v26 = vrot.slane %v5216_v31, 1 }
 0x951   :  { %v5254_v18 = vadd.f32 %v5253_v44, %v5252_v3 }
 0x952   :  { %v5218_v50 = vadd.f32 %v5217_v26, %v5216_v31 }
 0x953   :  { %v5255_v4 = vrot.slane %v5254_v18, 1 }
 0x954   :  { %v5219_v57 = vmul.f32 0.25, %v5218_v50 }
 0x955   :  { %v5256_v61 = vadd.f32 %v5255_v4, %v5254_v18 }
 0x956   :  { %5220 = vst.msk [vmem:[#allocation4] sm:$0x1] %vm5191_vm11, %v5219_v57 }
 0x957   :  { %6545 = shalt.err (!%p6542_p12)
}
 0x958   :  { %s6546_s28 = scalar_lea.hbm %s7765_s10, 16 }
 0x959   :  { %p6547_p13 = scmp.ne.s32.totalorder %s7765_s10, %s6546_s28  ;;  %p6550_p0 = scmp.lt.u32.totalorder %s6546_s28, %s7765_s10 }
 0x95b   :  { %p6552_p1 = pnand %p6550_p0, %p6547_p13 }
 0x95d   :  { %6555 = shalt.err (!%p6552_p1)
}
 0x95e   :  { %5282 = dma.vmem_to_hbm [thread:$0]  %s5280_s23, 16, %s7765_s10, [#allocation5]   ;;  %v5257_v55 = vmul.f32 0.125, %v5256_v61 }
 0x95f   :  { %s6556_s13 = scalar_lea.vmem %s7722_s25, 16  ;;  %s6560_s8 = scalar_lea.vmem %s7722_s25, 32 }
 0x960   :  { %5258 = vst.msk [vmem:[#allocation6] sm:$0x1] %vm5191_vm11, %v5257_v55  ;;  %p6557_p2 = scmp.ne.s32.totalorder %s7722_s25, %s6556_s13  ;;  %p6561_p3 = scmp.lt.s32.totalorder %s7722_s25, %s7722_s25 }
 0x961   :  { %p6562_p4 = scmp.lt.s32.totalorder %s6560_s8, %s6556_s13 }
 0x963   :  { %p6563_p5 = por %p6562_p4, %p6561_p3 }
 0x965   :  { %p6564_p6 = pnand %p6563_p5, %p6557_p2 }
 0x967   :  { %6567 = shalt.err (!%p6564_p6)
}
 0x968   :  { %s6568_s14 = scalar_lea.hbm %s7766_s11, 16 }
 0x969   :  { %p6569_p7 = scmp.ne.s32.totalorder %s7766_s11, %s6568_s14  ;;  %p6572_p8 = scmp.lt.u32.totalorder %s6568_s14, %s7766_s11 }
 0x96b   :  { %p6574_p9 = pnand %p6572_p8, %p6569_p7 }
 0x96d   :  { %6577 = shalt.err (!%p6574_p9)
}
 0x96e   :  { %5292 = dma.vmem_to_hbm [thread:$0]  %s7722_s25, 16, %s7766_s11, [#allocation5]  }
 0x96f   :  { %6578 = dma.done.wait [#allocation3], 16  }
 0x970   :  { %6579 = vsyncadd [#allocation3], 4294967280 }
 0x971   :  { %6580 = dma.done.wait [#allocation5], 32  }
 0x972   :  { %6581 = vsyncadd [#allocation5], 4294967264 }
 0x973   :  { %5304 = vsyncpa [#allocation3], 1 }
 0x974   :  { %5305 = vsyncpa [#allocation5], 1 }

</bundles_post_ra>
